<compile_context>
chip_gen: v7x
topology: tpu7x:2x2x1
jax: 0.10.0
libtpu: 0.0.40
codegen_flags: <defaults>
</compile_context>

<pallas_src>
import functools

import jax
import jax.numpy as jnp
import numpy as np
from jax import lax
from jax.experimental import pallas as pl
from jax.experimental.pallas import tpu as pltpu

CIN = 3     # input channels (RGB)
C0 = 32     # stem output channels
CE = 128    # MBConv expanded channels (lane-dense)
CO = 128    # feature channels returned by extract_features (lane-dense)
            # TODO(synk): real EfficientNet-B0 'features' have 1280 channels.
KSTEM = 9 * CIN   # im2col contraction depth of the 3x3 stem


def _silu_exact(x):
    # Used by the pure-JAX reference only.
    return x * (1.0 / (1.0 + jnp.exp(-x)))


def _silu_kernel(x):
    # exp -> EUP slot; approx reciprocal -> EUP vrcp (no refined VPU divide).
    return x * pl.reciprocal(1.0 + jnp.exp(-x), approx=True)


def _fused_feature_kernel(xs_ref, w_stem_ref, b_stem_ref, w_exp_ref, b_exp_ref,
                          w_dw_ref, b_dw_ref, w_head_ref, b_head_ref, out_ref,
                          *, ho, wo):
    bt, hw, k = xs_ref.shape
    m = bt * hw
    ce = w_exp_ref.shape[1]

    # (bt, hw, 27) -> (m, 27): contiguous leading-dim collapse (hw % 8 == 0),
    # a pure vreg-grid reinterpretation, not a relayout copy.
    xs = xs_ref[...].reshape(m, k)

    # ---- stem: single K=27 im2col matmul (tap slab built in the wrapper) ----
    a0 = _silu_kernel(
        jnp.dot(xs, w_stem_ref[...], preferred_element_type=jnp.float32)
        + b_stem_ref[...])                                       # (m, C0) f32

    # ---- MBConv expand 1x1 + SiLU (bf16 MXU, f32 accumulate/epilogue) ----
    a1 = _silu_kernel(
        jnp.dot(a0.astype(jnp.bfloat16), w_exp_ref[...],
                preferred_element_type=jnp.float32) + b_exp_ref[...])

    # ---- depthwise 3x3 + SiLU: channels on lanes, 9 roll/mask/MAC taps ----
    # Boundary masks hoisted out of the tap loop: 4 compares + 4 corner ANDs
    # total (vs 12 compares + 6 ANDs + per-tap modulo before).
    r_i = lax.broadcasted_iota(jnp.int32, (m, ce), 0)
    x_i = r_i % wo            # column within the image (hoisted, computed once)
    p_i = r_i % hw            # flat position within the image
    row_ok = {-1: p_i >= wo, 0: None, 1: p_i < hw - wo}
    col_ok = {-1: x_i >= 1, 0: None, 1: x_i < wo - 1}

    w_dw = w_dw_ref[...]                                # (9, ce) f32
    acc_dw = jnp.zeros((m, ce), jnp.float32)
    t = 0
    for dy in (-1, 0, 1):
        for dx in (-1, 0, 1):
            d = dy * wo + dx
            # out[r] = a1[r + d]; the circular wrap of roll (incl. wrap across
            # image boundaries in the flattened M rows) lands exactly on the
            # positions the hoisted masks zero out.
            shifted = pltpu.roll(a1, shift=(-d) % m, axis=0) if d else a1
            mask = row_ok[dy]
            if col_ok[dx] is not None:
                mask = col_ok[dx] if mask is None else (mask & col_ok[dx])
            if mask is not None:
                shifted = jnp.where(mask, shifted, 0.0)
            acc_dw = acc_dw + shifted * w_dw[t:t + 1, :]
            t += 1
    a2 = _silu_kernel(acc_dw + b_dw_ref[...])

    # ---- head 1x1 + SiLU, fused global average pool (AdaptiveAvgPool2d) ----
    a3 = _silu_kernel(
        jnp.dot(a2.astype(jnp.bfloat16), w_head_ref[...],
                preferred_element_type=jnp.float32) + b_head_ref[...])
    inv_hw = 1.0 / hw
    pooled = jnp.concatenate(
        [jnp.sum(a3[b * hw:(b + 1) * hw], axis=0, keepdims=True)
         for b in range(bt)], axis=0)                    # (bt, CO)
    out_ref[...] = (pooled * inv_hw).astype(out_ref.dtype)


def _pick_images_per_step(batch, hw, target_rows=256, max_rows=2048):
    """Smallest divisor of batch that fills the MXU M dim (cap for VMEM)."""
    best = 1
    for cand in range(1, batch + 1):
        if batch % cand:
            continue
        if cand * hw > max_rows:
            break
        best = cand
        if cand * hw >= target_rows:
            break
    return best


def _vmem_limit_bytes():
    # v5e/v6e have 128 MiB physical VMEM; v7x only 64 MiB per TensorCore.
    try:
        kind = jax.devices()[0].device_kind.lower()
    except Exception:  # pragma: no cover - defensive only
        kind = ""
    return (48 if "7" in kind else 64) * 1024 * 1024


@jax.jit
def extract_features(x_nchw, folded):
    """Pallas forward: x (B, Cin, H, W) NCHW f32 -> pooled features (B, CO)."""
    B, cin, H, W = x_nchw.shape
    if H % 2 or W % 2:
        raise ValueError("H and W must be even for the stride-2 stem.")
    ho, wo = H // 2, W // 2
    hw = ho * wo

    # Wrapper-side layout: NCHW -> NHWC, pad 1, then the stride-2 3x3 im2col
    # tap slab (B, hw, 27).  ~2.25x the input bytes (negligible for 3-channel
    # images) and the kernel sees one contraction instead of four in-kernel
    # slice/reshape relayouts.
    x = jnp.transpose(x_nchw, (0, 2, 3, 1))
    xp = jnp.pad(x, ((0, 0), (1, 1), (1, 1), (0, 0)))
    taps = [xp[:, p:p + 2 * ho:2, q:q + 2 * wo:2, :]
            for p in range(3) for q in range(3)]
    slab = jnp.concatenate(taps, axis=-1).reshape(B, hw, KSTEM)
    slab = slab.astype(jnp.bfloat16)

    bt = _pick_images_per_step(B, hw)
    kernel = functools.partial(_fused_feature_kernel, ho=ho, wo=wo)

    return pl.pallas_call(
        kernel,
        out_shape=jax.ShapeDtypeStruct((B, CO), jnp.float32),
        grid=(B // bt,),
        in_specs=[
            pl.BlockSpec((bt, hw, KSTEM), lambda g: (g, 0, 0)),
            pl.BlockSpec((KSTEM, C0), lambda g: (0, 0)),
            pl.BlockSpec((1, C0), lambda g: (0, 0)),
            pl.BlockSpec((C0, CE), lambda g: (0, 0)),
            pl.BlockSpec((1, CE), lambda g: (0, 0)),
            pl.BlockSpec((9, CE), lambda g: (0, 0)),
            pl.BlockSpec((1, CE), lambda g: (0, 0)),
            pl.BlockSpec((CE, CO), lambda g: (0, 0)),
            pl.BlockSpec((1, CO), lambda g: (0, 0)),
        ],
        out_specs=pl.BlockSpec((bt, CO), lambda g: (g, 0)),
        compiler_params=pltpu.CompilerParams(
            dimension_semantics=("parallel",),    # v7x: shard batch on 2 TCs
            vmem_limit_bytes=_vmem_limit_bytes(),
        ),
    )(slab, folded["w_stem_fold"], folded["b_stem"],
      folded["w_exp"], folded["b_exp"],
      folded["w_dw"], folded["b_dw"],
      folded["w_head"], folded["b_head"])


def init_params(key):
    ks = jax.random.split(key, 8)
    return {
        "w_stem": jax.random.normal(ks[0], (3, 3, CIN, C0), jnp.float32)
                  / np.sqrt(9 * CIN),
        "b_stem": 0.1 * jax.random.normal(ks[1], (C0,), jnp.float32),
        "w_exp": jax.random.normal(ks[2], (C0, CE), jnp.float32) / np.sqrt(C0),
        "b_exp": 0.1 * jax.random.normal(ks[3], (CE,), jnp.float32),
        "w_dw": jax.random.normal(ks[4], (3, 3, CE), jnp.float32) / 3.0,
        "b_dw": 0.1 * jax.random.normal(ks[5], (CE,), jnp.float32),
        "w_head": jax.random.normal(ks[6], (CE, CO), jnp.float32) / np.sqrt(CE),
        "b_head": 0.1 * jax.random.normal(ks[7], (CO,), jnp.float32),
    }


def fold_params(p):
    """Fold weights into the slabs consumed by the kernel (bf16 where MXU)."""
    return {
        # (3,3,CIN,C0) -> (27, C0): matches the wrapper's (p, q, cin) tap order.
        "w_stem_fold": jnp.reshape(p["w_stem"], (KSTEM, C0)).astype(jnp.bfloat16),
        "b_stem": p["b_stem"].reshape(1, C0),
        "w_exp": p["w_exp"].astype(jnp.bfloat16),
        "b_exp": p["b_exp"].reshape(1, CE),
        "w_dw": p["w_dw"].reshape(9, CE),       # f32: depthwise runs on the VPU
        "b_dw": p["b_dw"].reshape(1, CE),
        "w_head": p["w_head"].astype(jnp.bfloat16),
        "b_head": p["b_head"].reshape(1, CO),
    }


def reference_forward(x_nchw, p):
    """Pure-JAX (XLA) reference mirroring the kernel's matmul precision."""
    x = jnp.transpose(x_nchw, (0, 2, 3, 1))
    y = lax.conv_general_dilated(
        x.astype(jnp.bfloat16), p["w_stem"].astype(jnp.bfloat16),
        window_strides=(2, 2), padding=((1, 1), (1, 1)),
        dimension_numbers=("NHWC", "HWIO", "NHWC"),
        preferred_element_type=jnp.float32)
    a0 = _silu_exact(y + p["b_stem"])
    a1 = _silu_exact(jnp.einsum("bhwc,cd->bhwd", a0.astype(jnp.bfloat16),
                                p["w_exp"].astype(jnp.bfloat16),
                                preferred_element_type=jnp.float32) + p["b_exp"])
    dw = lax.conv_general_dilated(
        a1, p["w_dw"].reshape(3, 3, 1, CE),
        window_strides=(1, 1), padding=((1, 1), (1, 1)),
        dimension_numbers=("NHWC", "HWIO", "NHWC"),
        feature_group_count=CE)
    a2 = _silu_exact(dw + p["b_dw"])
    a3 = _silu_exact(jnp.einsum("bhwc,cd->bhwd", a2.astype(jnp.bfloat16),
                                p["w_head"].astype(jnp.bfloat16),
                                preferred_element_type=jnp.float32) + p["b_head"])
    return jnp.mean(a3, axis=(1, 2))   # AdaptiveAvgPool2d((1,1)) + flatten


if __name__ == "__main__":
    key = jax.random.PRNGKey(0)
    kp, kx = jax.random.split(key)
    params = init_params(kp)
    folded = fold_params(params)

    # Small NCHW image batch, as the PyTorch module's forward implies.
    x = jax.random.normal(kx, (2, CIN, 16, 16), jnp.float32)

    out = jax.block_until_ready(extract_features(x, folded))
    ref = jax.block_until_ready(jax.jit(reference_forward)(x, params))

    assert out.shape == (2, CO)
    # Tolerance covers bf16 MXU rounding + the approx EUP reciprocal in SiLU.
    np.testing.assert_allclose(np.asarray(out), np.asarray(ref),
                               rtol=2e-2, atol=2e-2)
    print("KERNEL_OK")
</pallas_src>

<mosaic_0001>
module attributes {stable_mosaic.version = 11 : i64} {
  func.func @_fused_feature_kernel(%arg0: i32, %arg1: memref<2x64x27xbf16, #tpu.memory_space<vmem>>, %arg2: memref<27x32xbf16, #tpu.memory_space<vmem>>, %arg3: memref<1x32xf32, #tpu.memory_space<vmem>>, %arg4: memref<32x128xbf16, #tpu.memory_space<vmem>>, %arg5: memref<1x128xf32, #tpu.memory_space<vmem>>, %arg6: memref<9x128xf32, #tpu.memory_space<vmem>>, %arg7: memref<1x128xf32, #tpu.memory_space<vmem>>, %arg8: memref<128x128xbf16, #tpu.memory_space<vmem>>, %arg9: memref<1x128xf32, #tpu.memory_space<vmem>>, %arg10: memref<2x128xf32, #tpu.memory_space<vmem>>) attributes {dimension_semantics = [#tpu.dimension_semantics<parallel>], iteration_bounds = array<i64: 1>, scalar_prefetch = 0 : i64, scratch_operands = 0 : i64, tpu.core_type = #tpu.core_type<tc>, window_params = [{transform_indices = @transform_0, window_bounds = array<i64: 2, 64, 27>}, {pipeline_mode = #tpu.pipeline_mode<synchronous>, transform_indices = @transform_1, window_bounds = array<i64: 27, 32>}, {pipeline_mode = #tpu.pipeline_mode<synchronous>, transform_indices = @transform_2, window_bounds = array<i64: 1, 32>}, {pipeline_mode = #tpu.pipeline_mode<synchronous>, transform_indices = @transform_3, window_bounds = array<i64: 32, 128>}, {pipeline_mode = #tpu.pipeline_mode<synchronous>, transform_indices = @transform_4, window_bounds = array<i64: 1, 128>}, {pipeline_mode = #tpu.pipeline_mode<synchronous>, transform_indices = @transform_5, window_bounds = array<i64: 9, 128>}, {pipeline_mode = #tpu.pipeline_mode<synchronous>, transform_indices = @transform_6, window_bounds = array<i64: 1, 128>}, {pipeline_mode = #tpu.pipeline_mode<synchronous>, transform_indices = @transform_7, window_bounds = array<i64: 128, 128>}, {pipeline_mode = #tpu.pipeline_mode<synchronous>, transform_indices = @transform_8, window_bounds = array<i64: 1, 128>}, {transform_indices = @transform_9, window_bounds = array<i64: 2, 128>}]} {
    %c0 = arith.constant 0 : index
    %c0_0 = arith.constant 0 : index
    %c0_1 = arith.constant 0 : index
    %0 = vector.load %arg1[%c0, %c0_0, %c0_1] : memref<2x64x27xbf16, #tpu.memory_space<vmem>>, vector<2x64x27xbf16>
    %1 = vector.shape_cast %0 : vector<2x64x27xbf16> to vector<128x27xbf16>
    %c0_2 = arith.constant 0 : index
    %c0_3 = arith.constant 0 : index
    %2 = vector.load %arg2[%c0_2, %c0_3] : memref<27x32xbf16, #tpu.memory_space<vmem>>, vector<27x32xbf16>
    %cst = arith.constant dense<0.000000e+00> : vector<128x32xf32>
    %3 = tpu.matmul %1, %2, %cst {dimension_numbers = #tpu.dot_dimension_numbers<[1], [0], [0], [1], [0, 0, 1, 1], [], []>} : vector<128x27xbf16>, vector<27x32xbf16>, vector<128x32xf32> -> vector<128x32xf32>
    %c0_4 = arith.constant 0 : index
    %c0_5 = arith.constant 0 : index
    %4 = vector.load %arg3[%c0_4, %c0_5] : memref<1x32xf32, #tpu.memory_space<vmem>>, vector<1x32xf32>
    %5 = vector.broadcast %4 : vector<1x32xf32> to vector<128x32xf32>
    %6 = arith.addf %3, %5 : vector<128x32xf32>
    %cst_6 = arith.constant 0.000000e+00 : f32
    %7 = vector.broadcast %cst_6 : f32 to vector<128x32xf32>
    %8 = arith.subf %7, %6 : vector<128x32xf32>
    %9 = math.exp %8 : vector<128x32xf32>
    %cst_7 = arith.constant 1.000000e+00 : f32
    %10 = vector.broadcast %cst_7 : f32 to vector<128x32xf32>
    %11 = arith.addf %10, %9 : vector<128x32xf32>
    %12 = tpu.reciprocal %11 {approx = true} : vector<128x32xf32> -> vector<128x32xf32>
    %13 = arith.mulf %6, %12 : vector<128x32xf32>
    %14 = arith.truncf %13 : vector<128x32xf32> to vector<128x32xbf16>
    %c0_8 = arith.constant 0 : index
    %c0_9 = arith.constant 0 : index
    %15 = vector.load %arg4[%c0_8, %c0_9] : memref<32x128xbf16, #tpu.memory_space<vmem>>, vector<32x128xbf16>
    %cst_10 = arith.constant dense<0.000000e+00> : vector<128x128xf32>
    %16 = tpu.matmul %14, %15, %cst_10 {dimension_numbers = #tpu.dot_dimension_numbers<[1], [0], [0], [1], [0, 0, 1, 1], [], []>} : vector<128x32xbf16>, vector<32x128xbf16>, vector<128x128xf32> -> vector<128x128xf32>
    %c0_11 = arith.constant 0 : index
    %c0_12 = arith.constant 0 : index
    %17 = vector.load %arg5[%c0_11, %c0_12] : memref<1x128xf32, #tpu.memory_space<vmem>>, vector<1x128xf32>
    %18 = vector.broadcast %17 : vector<1x128xf32> to vector<128x128xf32>
    %19 = arith.addf %16, %18 : vector<128x128xf32>
    %cst_13 = arith.constant 0.000000e+00 : f32
    %20 = vector.broadcast %cst_13 : f32 to vector<128x128xf32>
    %21 = arith.subf %20, %19 : vector<128x128xf32>
    %22 = math.exp %21 : vector<128x128xf32>
    %cst_14 = arith.constant 1.000000e+00 : f32
    %23 = vector.broadcast %cst_14 : f32 to vector<128x128xf32>
    %24 = arith.addf %23, %22 : vector<128x128xf32>
    %25 = tpu.reciprocal %24 {approx = true} : vector<128x128xf32> -> vector<128x128xf32>
    %26 = arith.mulf %19, %25 : vector<128x128xf32>
    %27 = tpu.iota {dimensions = array<i32: 0>} : vector<128x128xi32>
    %c8_i32 = arith.constant 8 : i32
    %c0_i32 = arith.constant 0 : i32
    %28 = arith.cmpi eq, %c8_i32, %c0_i32 : i32
    %c1_i32 = arith.constant 1 : i32
    %29 = arith.select %28, %c1_i32, %c8_i32 : i32
    %30 = vector.broadcast %29 : i32 to vector<128x128xi32>
    %31 = arith.remsi %27, %30 : vector<128x128xi32>
    %c0_i32_15 = arith.constant 0 : i32
    %32 = vector.broadcast %c0_i32_15 : i32 to vector<128x128xi32>
    %33 = arith.cmpi ne, %31, %32 : vector<128x128xi32>
    %c0_i32_16 = arith.constant 0 : i32
    %34 = vector.broadcast %c0_i32_16 : i32 to vector<128x128xi32>
    %35 = arith.cmpi slt, %31, %34 : vector<128x128xi32>
    %c0_i32_17 = arith.constant 0 : i32
    %36 = arith.cmpi slt, %29, %c0_i32_17 : i32
    %37 = vector.broadcast %36 : i1 to vector<128x128xi1>
    %38 = vector.broadcast %37 : vector<128x128xi1> to vector<128x128xi1>
    %39 = arith.xori %35, %38 : vector<128x128xi1>
    %40 = arith.andi %39, %33 : vector<128x128xi1>
    %41 = vector.broadcast %29 : i32 to vector<128x128xi32>
    %42 = arith.addi %31, %41 : vector<128x128xi32>
    %43 = arith.select %40, %42, %31 : vector<128x128xi1>, vector<128x128xi32>
    %c64_i32 = arith.constant 64 : i32
    %c0_i32_18 = arith.constant 0 : i32
    %44 = arith.cmpi eq, %c64_i32, %c0_i32_18 : i32
    %c1_i32_19 = arith.constant 1 : i32
    %45 = arith.select %44, %c1_i32_19, %c64_i32 : i32
    %46 = vector.broadcast %45 : i32 to vector<128x128xi32>
    %47 = arith.remsi %27, %46 : vector<128x128xi32>
    %c0_i32_20 = arith.constant 0 : i32
    %48 = vector.broadcast %c0_i32_20 : i32 to vector<128x128xi32>
    %49 = arith.cmpi ne, %47, %48 : vector<128x128xi32>
    %c0_i32_21 = arith.constant 0 : i32
    %50 = vector.broadcast %c0_i32_21 : i32 to vector<128x128xi32>
    %51 = arith.cmpi slt, %47, %50 : vector<128x128xi32>
    %c0_i32_22 = arith.constant 0 : i32
    %52 = arith.cmpi slt, %45, %c0_i32_22 : i32
    %53 = vector.broadcast %52 : i1 to vector<128x128xi1>
    %54 = vector.broadcast %53 : vector<128x128xi1> to vector<128x128xi1>
    %55 = arith.xori %51, %54 : vector<128x128xi1>
    %56 = arith.andi %55, %49 : vector<128x128xi1>
    %57 = vector.broadcast %45 : i32 to vector<128x128xi32>
    %58 = arith.addi %47, %57 : vector<128x128xi32>
    %59 = arith.select %56, %58, %47 : vector<128x128xi1>, vector<128x128xi32>
    %c8_i32_23 = arith.constant 8 : i32
    %60 = vector.broadcast %c8_i32_23 : i32 to vector<128x128xi32>
    %61 = arith.cmpi sge, %59, %60 : vector<128x128xi32>
    %c56_i32 = arith.constant 56 : i32
    %62 = vector.broadcast %c56_i32 : i32 to vector<128x128xi32>
    %63 = arith.cmpi slt, %59, %62 : vector<128x128xi32>
    %c1_i32_24 = arith.constant 1 : i32
    %64 = vector.broadcast %c1_i32_24 : i32 to vector<128x128xi32>
    %65 = arith.cmpi sge, %43, %64 : vector<128x128xi32>
    %c7_i32 = arith.constant 7 : i32
    %66 = vector.broadcast %c7_i32 : i32 to vector<128x128xi32>
    %67 = arith.cmpi slt, %43, %66 : vector<128x128xi32>
    %c0_25 = arith.constant 0 : index
    %c0_26 = arith.constant 0 : index
    %68 = vector.load %arg6[%c0_25, %c0_26] : memref<9x128xf32, #tpu.memory_space<vmem>>, vector<9x128xf32>
    %cst_27 = arith.constant 0.000000e+00 : f32
    %69 = vector.broadcast %cst_27 : f32 to vector<128x128xf32>
    %c9_i32 = arith.constant 9 : i32
    %70 = tpu.dynamic_rotate %26 by %c9_i32 dim 0 : vector<128x128xf32>, i32 -> vector<128x128xf32>
    %71 = arith.andi %61, %65 : vector<128x128xi1>
    %cst_28 = arith.constant 0.000000e+00 : f32
    %72 = vector.broadcast %cst_28 : f32 to vector<128x128xf32>
    %73 = arith.select %71, %70, %72 : vector<128x128xi1>, vector<128x128xf32>
    %74 = vector.extract_strided_slice %68 {offsets = [0, 0], sizes = [1, 128], strides = [1, 1]} : vector<9x128xf32> to vector<1x128xf32>
    %75 = vector.broadcast %74 : vector<1x128xf32> to vector<128x128xf32>
    %76 = arith.mulf %73, %75 : vector<128x128xf32>
    %77 = arith.addf %69, %76 : vector<128x128xf32>
    %c8_i32_29 = arith.constant 8 : i32
    %78 = tpu.dynamic_rotate %26 by %c8_i32_29 dim 0 : vector<128x128xf32>, i32 -> vector<128x128xf32>
    %cst_30 = arith.constant 0.000000e+00 : f32
    %79 = vector.broadcast %cst_30 : f32 to vector<128x128xf32>
    %80 = arith.select %61, %78, %79 : vector<128x128xi1>, vector<128x128xf32>
    %81 = vector.extract_strided_slice %68 {offsets = [1, 0], sizes = [1, 128], strides = [1, 1]} : vector<9x128xf32> to vector<1x128xf32>
    %82 = vector.broadcast %81 : vector<1x128xf32> to vector<128x128xf32>
    %83 = arith.mulf %80, %82 : vector<128x128xf32>
    %84 = arith.addf %77, %83 : vector<128x128xf32>
    %c7_i32_31 = arith.constant 7 : i32
    %85 = tpu.dynamic_rotate %26 by %c7_i32_31 dim 0 : vector<128x128xf32>, i32 -> vector<128x128xf32>
    %86 = arith.andi %61, %67 : vector<128x128xi1>
    %cst_32 = arith.constant 0.000000e+00 : f32
    %87 = vector.broadcast %cst_32 : f32 to vector<128x128xf32>
    %88 = arith.select %86, %85, %87 : vector<128x128xi1>, vector<128x128xf32>
    %89 = vector.extract_strided_slice %68 {offsets = [2, 0], sizes = [1, 128], strides = [1, 1]} : vector<9x128xf32> to vector<1x128xf32>
    %90 = vector.broadcast %89 : vector<1x128xf32> to vector<128x128xf32>
    %91 = arith.mulf %88, %90 : vector<128x128xf32>
    %92 = arith.addf %84, %91 : vector<128x128xf32>
    %c1_i32_33 = arith.constant 1 : i32
    %93 = tpu.dynamic_rotate %26 by %c1_i32_33 dim 0 : vector<128x128xf32>, i32 -> vector<128x128xf32>
    %cst_34 = arith.constant 0.000000e+00 : f32
    %94 = vector.broadcast %cst_34 : f32 to vector<128x128xf32>
    %95 = arith.select %65, %93, %94 : vector<128x128xi1>, vector<128x128xf32>
    %96 = vector.extract_strided_slice %68 {offsets = [3, 0], sizes = [1, 128], strides = [1, 1]} : vector<9x128xf32> to vector<1x128xf32>
    %97 = vector.broadcast %96 : vector<1x128xf32> to vector<128x128xf32>
    %98 = arith.mulf %95, %97 : vector<128x128xf32>
    %99 = arith.addf %92, %98 : vector<128x128xf32>
    %100 = vector.extract_strided_slice %68 {offsets = [4, 0], sizes = [1, 128], strides = [1, 1]} : vector<9x128xf32> to vector<1x128xf32>
    %101 = vector.broadcast %100 : vector<1x128xf32> to vector<128x128xf32>
    %102 = arith.mulf %26, %101 : vector<128x128xf32>
    %103 = arith.addf %99, %102 : vector<128x128xf32>
    %c127_i32 = arith.constant 127 : i32
    %104 = tpu.dynamic_rotate %26 by %c127_i32 dim 0 : vector<128x128xf32>, i32 -> vector<128x128xf32>
    %cst_35 = arith.constant 0.000000e+00 : f32
    %105 = vector.broadcast %cst_35 : f32 to vector<128x128xf32>
    %106 = arith.select %67, %104, %105 : vector<128x128xi1>, vector<128x128xf32>
    %107 = vector.extract_strided_slice %68 {offsets = [5, 0], sizes = [1, 128], strides = [1, 1]} : vector<9x128xf32> to vector<1x128xf32>
    %108 = vector.broadcast %107 : vector<1x128xf32> to vector<128x128xf32>
    %109 = arith.mulf %106, %108 : vector<128x128xf32>
    %110 = arith.addf %103, %109 : vector<128x128xf32>
    %c121_i32 = arith.constant 121 : i32
    %111 = tpu.dynamic_rotate %26 by %c121_i32 dim 0 : vector<128x128xf32>, i32 -> vector<128x128xf32>
    %112 = arith.andi %63, %65 : vector<128x128xi1>
    %cst_36 = arith.constant 0.000000e+00 : f32
    %113 = vector.broadcast %cst_36 : f32 to vector<128x128xf32>
    %114 = arith.select %112, %111, %113 : vector<128x128xi1>, vector<128x128xf32>
    %115 = vector.extract_strided_slice %68 {offsets = [6, 0], sizes = [1, 128], strides = [1, 1]} : vector<9x128xf32> to vector<1x128xf32>
    %116 = vector.broadcast %115 : vector<1x128xf32> to vector<128x128xf32>
    %117 = arith.mulf %114, %116 : vector<128x128xf32>
    %118 = arith.addf %110, %117 : vector<128x128xf32>
    %c120_i32 = arith.constant 120 : i32
    %119 = tpu.dynamic_rotate %26 by %c120_i32 dim 0 : vector<128x128xf32>, i32 -> vector<128x128xf32>
    %cst_37 = arith.constant 0.000000e+00 : f32
    %120 = vector.broadcast %cst_37 : f32 to vector<128x128xf32>
    %121 = arith.select %63, %119, %120 : vector<128x128xi1>, vector<128x128xf32>
    %122 = vector.extract_strided_slice %68 {offsets = [7, 0], sizes = [1, 128], strides = [1, 1]} : vector<9x128xf32> to vector<1x128xf32>
    %123 = vector.broadcast %122 : vector<1x128xf32> to vector<128x128xf32>
    %124 = arith.mulf %121, %123 : vector<128x128xf32>
    %125 = arith.addf %118, %124 : vector<128x128xf32>
    %c119_i32 = arith.constant 119 : i32
    %126 = tpu.dynamic_rotate %26 by %c119_i32 dim 0 : vector<128x128xf32>, i32 -> vector<128x128xf32>
    %127 = arith.andi %63, %67 : vector<128x128xi1>
    %cst_38 = arith.constant 0.000000e+00 : f32
    %128 = vector.broadcast %cst_38 : f32 to vector<128x128xf32>
    %129 = arith.select %127, %126, %128 : vector<128x128xi1>, vector<128x128xf32>
    %130 = vector.extract_strided_slice %68 {offsets = [8, 0], sizes = [1, 128], strides = [1, 1]} : vector<9x128xf32> to vector<1x128xf32>
    %131 = vector.broadcast %130 : vector<1x128xf32> to vector<128x128xf32>
    %132 = arith.mulf %129, %131 : vector<128x128xf32>
    %133 = arith.addf %125, %132 : vector<128x128xf32>
    %c0_39 = arith.constant 0 : index
    %c0_40 = arith.constant 0 : index
    %134 = vector.load %arg7[%c0_39, %c0_40] : memref<1x128xf32, #tpu.memory_space<vmem>>, vector<1x128xf32>
    %135 = vector.broadcast %134 : vector<1x128xf32> to vector<128x128xf32>
    %136 = arith.addf %133, %135 : vector<128x128xf32>
    %cst_41 = arith.constant 0.000000e+00 : f32
    %137 = vector.broadcast %cst_41 : f32 to vector<128x128xf32>
    %138 = arith.subf %137, %136 : vector<128x128xf32>
    %139 = math.exp %138 : vector<128x128xf32>
    %cst_42 = arith.constant 1.000000e+00 : f32
    %140 = vector.broadcast %cst_42 : f32 to vector<128x128xf32>
    %141 = arith.addf %140, %139 : vector<128x128xf32>
    %142 = tpu.reciprocal %141 {approx = true} : vector<128x128xf32> -> vector<128x128xf32>
    %143 = arith.mulf %136, %142 : vector<128x128xf32>
    %144 = arith.truncf %143 : vector<128x128xf32> to vector<128x128xbf16>
    %c0_43 = arith.constant 0 : index
    %c0_44 = arith.constant 0 : index
    %145 = vector.load %arg8[%c0_43, %c0_44] : memref<128x128xbf16, #tpu.memory_space<vmem>>, vector<128x128xbf16>
    %cst_45 = arith.constant dense<0.000000e+00> : vector<128x128xf32>
    %146 = tpu.matmul %144, %145, %cst_45 {dimension_numbers = #tpu.dot_dimension_numbers<[1], [0], [0], [1], [0, 0, 1, 1], [], []>} : vector<128x128xbf16>, vector<128x128xbf16>, vector<128x128xf32> -> vector<128x128xf32>
    %c0_46 = arith.constant 0 : index
    %c0_47 = arith.constant 0 : index
    %147 = vector.load %arg9[%c0_46, %c0_47] : memref<1x128xf32, #tpu.memory_space<vmem>>, vector<1x128xf32>
    %148 = vector.broadcast %147 : vector<1x128xf32> to vector<128x128xf32>
    %149 = arith.addf %146, %148 : vector<128x128xf32>
    %cst_48 = arith.constant 0.000000e+00 : f32
    %150 = vector.broadcast %cst_48 : f32 to vector<128x128xf32>
    %151 = arith.subf %150, %149 : vector<128x128xf32>
    %152 = math.exp %151 : vector<128x128xf32>
    %cst_49 = arith.constant 1.000000e+00 : f32
    %153 = vector.broadcast %cst_49 : f32 to vector<128x128xf32>
    %154 = arith.addf %153, %152 : vector<128x128xf32>
    %155 = tpu.reciprocal %154 {approx = true} : vector<128x128xf32> -> vector<128x128xf32>
    %156 = arith.mulf %149, %155 : vector<128x128xf32>
    %157 = vector.extract_strided_slice %156 {offsets = [0, 0], sizes = [64, 128], strides = [1, 1]} : vector<128x128xf32> to vector<64x128xf32>
    %cst_50 = arith.constant dense<0.000000e+00> : vector<128xf32>
    %158 = vector.multi_reduction <add>, %157, %cst_50 [0] : vector<64x128xf32> to vector<128xf32>
    %159 = vector.shape_cast %158 : vector<128xf32> to vector<1x128xf32>
    %160 = vector.extract_strided_slice %156 {offsets = [64, 0], sizes = [64, 128], strides = [1, 1]} : vector<128x128xf32> to vector<64x128xf32>
    %cst_51 = arith.constant dense<0.000000e+00> : vector<128xf32>
    %161 = vector.multi_reduction <add>, %160, %cst_51 [0] : vector<64x128xf32> to vector<128xf32>
    %162 = vector.shape_cast %161 : vector<128xf32> to vector<1x128xf32>
    %163 = tpu.concatenate %159, %162 in 0 : vector<1x128xf32>, vector<1x128xf32> -> vector<2x128xf32>
    %cst_52 = arith.constant 1.562500e-02 : f32
    %164 = vector.broadcast %cst_52 : f32 to vector<2x128xf32>
    %165 = arith.mulf %163, %164 : vector<2x128xf32>
    %c0_53 = arith.constant 0 : index
    %c0_54 = arith.constant 0 : index
    %166 = vector.load %arg10[%c0_53, %c0_54] : memref<2x128xf32, #tpu.memory_space<vmem>>, vector<2x128xf32>
    tpu.vector_store %arg10[%c0_53, %c0_54], %165 {strides = array<i32>} : memref<2x128xf32, #tpu.memory_space<vmem>>, vector<2x128xf32>,
    return
  }
  func.func @transform_0(%arg0: i32) -> (i32, i32, i32) {
    %c0_i32 = arith.constant 0 : i32
    %c0_i32_0 = arith.constant 0 : i32
    %c0_i32_1 = arith.constant 0 : i32
    return %arg0, %c0_i32, %c0_i32_0 : i32, i32, i32
  }
  func.func @transform_1(%arg0: i32) -> (i32, i32) {
    %c0_i32 = arith.constant 0 : i32
    %c0_i32_0 = arith.constant 0 : i32
    %c0_i32_1 = arith.constant 0 : i32
    return %c0_i32, %c0_i32_0 : i32, i32
  }
  func.func @transform_2(%arg0: i32) -> (i32, i32) {
    %c0_i32 = arith.constant 0 : i32
    %c0_i32_0 = arith.constant 0 : i32
    %c0_i32_1 = arith.constant 0 : i32
    return %c0_i32, %c0_i32_0 : i32, i32
  }
  func.func @transform_3(%arg0: i32) -> (i32, i32) {
    %c0_i32 = arith.constant 0 : i32
    %c0_i32_0 = arith.constant 0 : i32
    %c0_i32_1 = arith.constant 0 : i32
    return %c0_i32, %c0_i32_0 : i32, i32
  }
  func.func @transform_4(%arg0: i32) -> (i32, i32) {
    %c0_i32 = arith.constant 0 : i32
    %c0_i32_0 = arith.constant 0 : i32
    %c0_i32_1 = arith.constant 0 : i32
    return %c0_i32, %c0_i32_0 : i32, i32
  }
  func.func @transform_5(%arg0: i32) -> (i32, i32) {
    %c0_i32 = arith.constant 0 : i32
    %c0_i32_0 = arith.constant 0 : i32
    %c0_i32_1 = arith.constant 0 : i32
    return %c0_i32, %c0_i32_0 : i32, i32
  }
  func.func @transform_6(%arg0: i32) -> (i32, i32) {
    %c0_i32 = arith.constant 0 : i32
    %c0_i32_0 = arith.constant 0 : i32
    %c0_i32_1 = arith.constant 0 : i32
    return %c0_i32, %c0_i32_0 : i32, i32
  }
  func.func @transform_7(%arg0: i32) -> (i32, i32) {
    %c0_i32 = arith.constant 0 : i32
    %c0_i32_0 = arith.constant 0 : i32
    %c0_i32_1 = arith.constant 0 : i32
    return %c0_i32, %c0_i32_0 : i32, i32
  }
  func.func @transform_8(%arg0: i32) -> (i32, i32) {
    %c0_i32 = arith.constant 0 : i32
    %c0_i32_0 = arith.constant 0 : i32
    %c0_i32_1 = arith.constant 0 : i32
    return %c0_i32, %c0_i32_0 : i32, i32
  }
  func.func @transform_9(%arg0: i32) -> (i32, i32) {
    %c0_i32 = arith.constant 0 : i32
    %c0_i32_0 = arith.constant 0 : i32
    return %arg0, %c0_i32 : i32, i32
  }
}

</mosaic_0001>

<bundles_post_ra>
// kernel: extract_features.1
= control target key start
LH: loop header
LB: loop body
LE: loop exit
PB: predicated region body
PF: predicated region fallthrough
CT: control target
= control target key end

     0   :  { %14 = vsyncpa [#allocation3], 0  ;;  %s4566_s0 = inlined_call_operand.hbm [shape: bf16[2,64,27], index: 0, kind: input, shape index: {}]   ;;  %s4567_s1 = inlined_call_operand.hbm [shape: bf16[27,32], index: 1, kind: input, shape index: {}]   ;;  %s4568_s2 = inlined_call_operand.hbm [shape: f32[1,32], index: 2, kind: input, shape index: {}]   ;;  %s4569_s3 = inlined_call_operand.hbm [shape: bf16[32,128], index: 3, kind: input, shape index: {}]   ;;  %s4570_s4 = inlined_call_operand.hbm [shape: f32[1,128], index: 4, kind: input, shape index: {}]   ;;  %s4571_s5 = inlined_call_operand.hbm [shape: f32[9,128], index: 5, kind: input, shape index: {}]   ;;  %s4572_s6 = inlined_call_operand.hbm [shape: f32[1,128], index: 6, kind: input, shape index: {}]   ;;  %s4573_s7 = inlined_call_operand.hbm [shape: bf16[128,128], index: 7, kind: input, shape index: {}]   ;;  %s4574_s8 = inlined_call_operand.hbm [shape: f32[1,128], index: 8, kind: input, shape index: {}]   ;;  %s4575_s9 = inlined_call_operand.hbm [shape: f32[2,128], index: 9, kind: output, shape index: {}]  }
   0x1   :  { %15 = vsyncpa [#allocation6], 0 }
   0x2   :  { %16 = vsyncpa [#allocation9], 0 }
   0x3   :  { %17 = vsyncpa [#allocation12], 0 }
   0x4   :  { %18 = vsyncpa [#allocation15], 0 }
   0x5   :  { %19 = vsyncpa [#allocation4], 0  ;;  %s2878_s30 = smov [#allocation5]   ;;  %s2879_s11 = smov [#allocation8]  }
   0x6   :  { %s37_s10 = sshll.u32 %s2878_s30, 4  ;;  %s59_s12 = sshll.u32 %s2879_s11, 4  ;;  %s38_s10 = int_to_ptr.vmem [resolvable:$true] %s37_s10  ;;  %s2943_s12 = int_to_ptr.vmem [resolvable:$true] %s59_s12 }
   0x7   :  { %s2646_s15 = scalar_lea.hbm %s4567_s1, 256 }
   0x8   :  { %p2647_p0 = scmp.ne.s32.totalorder %s4567_s1, %s2646_s15  ;;  %p2650_p1 = scmp.lt.u32.totalorder %s2646_s15, %s4567_s1 }
   0xa   :  { %p2652_p2 = pnand %p2650_p1, %p2647_p0 }
   0xc   :  { %2655 = shalt.err (!%p2652_p2)
}
   0xd   :  { %s2656_s20 = scalar_lea.vmem %s38_s10, 256  ;;  %p2661_p4 = scmp.lt.s32.totalorder %s38_s10, %s38_s10 }
   0xe   :  { %p2657_p3 = scmp.ne.s32.totalorder %s38_s10, %s2656_s20  ;;  %p2662_p5 = scmp.lt.s32.totalorder %s2656_s20, %s2656_s20 }
  0x10   :  { %p2663_p6 = por %p2662_p5, %p2661_p4 }
  0x12   :  { %p2664_p7 = pnand %p2663_p6, %p2657_p3 }
  0x14   :  { %2667 = shalt.err (!%p2664_p7)
}
  0x15   :  { %s2880_s21 = smov 64   ;;  %s2881_s22 = smov 4  }
  0x16   :  { %43 = dma.hbm_to_vmem [thread:$0]  %s4567_s1, 256, %s38_s10, [#allocation6], %s2880_s21, %s2880_s21, %s2881_s22  }
  0x17   :  { %s2668_s27 = scalar_lea.hbm %s4569_s3, 256 }
  0x18   :  { %p2669_p8 = scmp.ne.s32.totalorder %s4569_s3, %s2668_s27  ;;  %p2672_p9 = scmp.lt.u32.totalorder %s2668_s27, %s4569_s3 }
  0x1a   :  { %p2674_p10 = pnand %p2672_p9, %p2669_p8 }
  0x1c   :  { %2677 = shalt.err (!%p2674_p10)
}
  0x1d   :  { %s2678_s13 = scalar_lea.vmem %s2943_s12, 256  ;;  %p2683_p12 = scmp.lt.s32.totalorder %s2943_s12, %s2943_s12 }
  0x1e   :  { %p2679_p11 = scmp.ne.s32.totalorder %s2943_s12, %s2678_s13  ;;  %p2684_p13 = scmp.lt.s32.totalorder %s2678_s13, %s2678_s13 }
  0x20   :  { %p2685_p0 = por %p2684_p13, %p2683_p12 }
  0x22   :  { %p2686_p1 = pnand %p2685_p0, %p2679_p11 }
  0x24   :  { %2689 = shalt.err (!%p2686_p1)
}
  0x25   :  { %65 = dma.hbm_to_vmem [thread:$0]  %s4569_s3, 256, %s2943_s12, [#allocation9], %s2880_s21, %s2880_s21, %s2881_s22  }
  0x26   :  { %s2882_s14 = smov [#allocation11]   ;;  %s2690_s18 = scalar_lea.hbm %s4571_s5, 256 }
  0x27   :  { %s81_s15 = sshll.u32 %s2882_s14, 4  ;;  %p2691_p2 = scmp.ne.s32.totalorder %s4571_s5, %s2690_s18  ;;  %s82_s15 = int_to_ptr.vmem [resolvable:$true] %s81_s15 }
  0x28   :  { %p2694_p3 = scmp.lt.u32.totalorder %s2690_s18, %s4571_s5 }
  0x2a   :  { %p2696_p4 = pnand %p2694_p3, %p2691_p2 }
  0x2c   :  { %2699 = shalt.err (!%p2696_p4)
}
  0x2d   :  { %s2700_s25 = scalar_lea.vmem %s82_s15, 256  ;;  %p2705_p6 = scmp.lt.s32.totalorder %s82_s15, %s82_s15 }
  0x2e   :  { %p2701_p5 = scmp.ne.s32.totalorder %s82_s15, %s2700_s25  ;;  %p2706_p7 = scmp.lt.s32.totalorder %s2700_s25, %s2700_s25 }
  0x30   :  { %p2707_p8 = por %p2706_p7, %p2705_p6 }
  0x32   :  { %p2708_p9 = pnand %p2707_p8, %p2701_p5 }
  0x34   :  { %2711 = shalt.err (!%p2708_p9)
}
  0x35   :  { %s2883_s3 = smov 128   ;;  %s2884_s12 = smov 8  }
  0x36   :  { %87 = dma.hbm_to_vmem [thread:$0]  %s4571_s5, 256, %s82_s15, [#allocation12], %s2883_s3, %s2883_s3, %s2884_s12  }
  0x37   :  { %s2885_s28 = smov [#allocation14]   ;;  %s2886_s30 = smov [#allocation2]  }
  0x38   :  { %s103_s29 = sshll.u32 %s2885_s28, 4  ;;  %s25_s11 = sshll.u32 %s2886_s30, 4  ;;  %s104_s29 = int_to_ptr.vmem [resolvable:$true] %s103_s29  ;;  %s26_s11 = int_to_ptr.vmem [resolvable:$true] %s25_s11 }
  0x39   :  { %s2712_s10 = scalar_lea.hbm %s4573_s7, 1024 }
  0x3a   :  { %p2713_p10 = scmp.ne.s32.totalorder %s4573_s7, %s2712_s10  ;;  %p2716_p11 = scmp.lt.u32.totalorder %s2712_s10, %s4573_s7 }
  0x3c   :  { %p2718_p12 = pnand %p2716_p11, %p2713_p10 }
  0x3e   :  { %2721 = shalt.err (!%p2718_p12)
}
  0x3f   :  { %s2722_s5 = scalar_lea.vmem %s104_s29, 1024  ;;  %p2727_p0 = scmp.lt.s32.totalorder %s104_s29, %s104_s29 }
  0x40   :  { %p2723_p13 = scmp.ne.s32.totalorder %s104_s29, %s2722_s5  ;;  %p2728_p1 = scmp.lt.s32.totalorder %s2722_s5, %s2722_s5 }
  0x42   :  { %p2729_p2 = por %p2728_p1, %p2727_p0 }
  0x44   :  { %p2730_p3 = pnand %p2729_p2, %p2723_p13 }
  0x46   :  { %2733 = shalt.err (!%p2730_p3)
}
  0x47   :  { %109 = dma.hbm_to_vmem [thread:$0]  %s4573_s7, 1024, %s104_s29, [#allocation15], %s2880_s21, %s2880_s21, %s2881_s22  }
  0x48   :  { %s2734_s24 = scalar_lea.hbm %s4566_s0, 1024 }
  0x49   :  { %p2735_p4 = scmp.ne.s32.totalorder %s4566_s0, %s2734_s24  ;;  %p2738_p5 = scmp.lt.u32.totalorder %s2734_s24, %s4566_s0 }
  0x4b   :  { %p2740_p6 = pnand %p2738_p5, %p2735_p4 }
  0x4d   :  { %2743 = shalt.err (!%p2740_p6)
}
  0x4e   :  { %s2744_s27 = scalar_lea.vmem %s26_s11, 1024  ;;  %p2749_p8 = scmp.lt.s32.totalorder %s26_s11, %s26_s11 }
  0x4f   :  { %p2745_p7 = scmp.ne.s32.totalorder %s26_s11, %s2744_s27  ;;  %p2750_p9 = scmp.lt.s32.totalorder %s2744_s27, %s2744_s27 }
  0x51   :  { %p2751_p10 = por %p2750_p9, %p2749_p8 }
  0x53   :  { %p2752_p11 = pnand %p2751_p10, %p2745_p7 }
  0x55   :  { %2755 = shalt.err (!%p2752_p11)
}
  0x56   :  { %31 = dma.hbm_to_vmem [thread:$0]  %s4566_s0, 1024, %s26_s11, [#allocation3], %s2880_s21, %s2880_s21, %s2881_s22  }
  0x57   :  { %s2887_s29 = smov [#allocation7]   ;;  %s2888_s13 = smov [#allocation10]  }
  0x58   :  { %s50_s30 = sshll.u32 %s2887_s29, 4  ;;  %s72_s1 = sshll.u32 %s2888_s13, 4  ;;  %s51_s30 = int_to_ptr.vmem [resolvable:$true] %s50_s30  ;;  %s73_s1 = int_to_ptr.vmem [resolvable:$true] %s72_s1 }
  0x59   :  { %s2756_s16 = scalar_lea.hbm %s4568_s2, 16 }
  0x5a   :  { %p2757_p12 = scmp.ne.s32.totalorder %s4568_s2, %s2756_s16  ;;  %p2760_p13 = scmp.lt.u32.totalorder %s2756_s16, %s4568_s2 }
  0x5c   :  { %p2762_p0 = pnand %p2760_p13, %p2757_p12 }
  0x5e   :  { %2765 = shalt.err (!%p2762_p0)
}
  0x5f   :  { %s2766_s0 = scalar_lea.vmem %s51_s30, 16  ;;  %s2770_s21 = scalar_lea.vmem %s51_s30, 32 }
  0x60   :  { %p2767_p1 = scmp.ne.s32.totalorder %s51_s30, %s2766_s0  ;;  %p2771_p2 = scmp.lt.s32.totalorder %s51_s30, %s51_s30 }
  0x61   :  { %p2772_p3 = scmp.lt.s32.totalorder %s2770_s21, %s2766_s0 }
  0x63   :  { %p2773_p4 = por %p2772_p3, %p2771_p2 }
  0x65   :  { %p2774_p5 = pnand %p2773_p4, %p2767_p1 }
  0x67   :  { %2777 = shalt.err (!%p2774_p5)
}
  0x68   :  { %53 = dma.hbm_to_vmem [thread:$0]  %s4568_s2, 16, %s51_s30, [#allocation6]  }
  0x69   :  { %s2778_s23 = scalar_lea.hbm %s4570_s4, 16 }
  0x6a   :  { %p2779_p6 = scmp.ne.s32.totalorder %s4570_s4, %s2778_s23  ;;  %p2782_p7 = scmp.lt.u32.totalorder %s2778_s23, %s4570_s4 }
  0x6c   :  { %p2784_p8 = pnand %p2782_p7, %p2779_p6 }
  0x6e   :  { %2787 = shalt.err (!%p2784_p8)
}
  0x6f   :  { %s2788_s26 = scalar_lea.vmem %s73_s1, 16  ;;  %s2792_s27 = scalar_lea.vmem %s73_s1, 32 }
  0x70   :  { %p2789_p9 = scmp.ne.s32.totalorder %s73_s1, %s2788_s26  ;;  %p2793_p10 = scmp.lt.s32.totalorder %s73_s1, %s73_s1 }
  0x71   :  { %p2794_p11 = scmp.lt.s32.totalorder %s2792_s27, %s2788_s26 }
  0x73   :  { %p2795_p12 = por %p2794_p11, %p2793_p10 }
  0x75   :  { %p2796_p13 = pnand %p2795_p12, %p2789_p9 }
  0x77   :  { %2799 = shalt.err (!%p2796_p13)
}
  0x78   :  { %75 = dma.hbm_to_vmem [thread:$0]  %s4570_s4, 16, %s73_s1, [#allocation9]  }
  0x79   :  { %s2889_s28 = smov [#allocation13]   ;;  %s2890_s30 = smov [#allocation16]  }
  0x7a   :  { %s94_s29 = sshll.u32 %s2889_s28, 4  ;;  %s116_s13 = sshll.u32 %s2890_s30, 4  ;;  %s95_s29 = int_to_ptr.vmem [resolvable:$true] %s94_s29  ;;  %s117_s13 = int_to_ptr.vmem [resolvable:$true] %s116_s13 }
  0x7b   :  { %s2800_s16 = scalar_lea.hbm %s4572_s6, 16 }
  0x7c   :  { %p2801_p0 = scmp.ne.s32.totalorder %s4572_s6, %s2800_s16  ;;  %p2804_p1 = scmp.lt.u32.totalorder %s2800_s16, %s4572_s6 }
  0x7e   :  { %p2806_p2 = pnand %p2804_p1, %p2801_p0 }
  0x80   :  { %2809 = shalt.err (!%p2806_p2)
}
  0x81   :  { %s2810_s4 = scalar_lea.vmem %s95_s29, 16  ;;  %s2814_s1 = scalar_lea.vmem %s95_s29, 32 }
  0x82   :  { %p2811_p3 = scmp.ne.s32.totalorder %s95_s29, %s2810_s4  ;;  %p2815_p4 = scmp.lt.s32.totalorder %s95_s29, %s95_s29 }
  0x83   :  { %p2816_p5 = scmp.lt.s32.totalorder %s2814_s1, %s2810_s4 }
  0x85   :  { %p2817_p6 = por %p2816_p5, %p2815_p4 }
  0x87   :  { %p2818_p7 = pnand %p2817_p6, %p2811_p3 }
  0x89   :  { %2821 = shalt.err (!%p2818_p7)
}
  0x8a   :  { %97 = dma.hbm_to_vmem [thread:$0]  %s4572_s6, 16, %s95_s29, [#allocation12]  }
  0x8b   :  { %s2822_s19 = scalar_lea.hbm %s4574_s8, 16 }
  0x8c   :  { %p2823_p8 = scmp.ne.s32.totalorder %s4574_s8, %s2822_s19  ;;  %p2826_p9 = scmp.lt.u32.totalorder %s2822_s19, %s4574_s8 }
  0x8e   :  { %p2828_p10 = pnand %p2826_p9, %p2823_p8 }
  0x90   :  { %2831 = shalt.err (!%p2828_p10)
}
  0x91   :  { %s2832_s3 = scalar_lea.vmem %s117_s13, 16  ;;  %s2836_s12 = scalar_lea.vmem %s117_s13, 32 }
  0x92   :  { %p2833_p11 = scmp.ne.s32.totalorder %s117_s13, %s2832_s3  ;;  %p2837_p12 = scmp.lt.s32.totalorder %s117_s13, %s117_s13 }
  0x93   :  { %p2838_p13 = scmp.lt.s32.totalorder %s2836_s12, %s2832_s3 }
  0x95   :  { %p2839_p0 = por %p2838_p13, %p2837_p12 }
  0x97   :  { %p2840_p1 = pnand %p2839_p0, %p2833_p11 }
  0x99   :  { %2843 = shalt.err (!%p2840_p1)
}
  0x9a   :  { %119 = dma.hbm_to_vmem [thread:$0]  %s4574_s8, 16, %s117_s13, [#allocation15]  }
  0x9b   :  { %2866 = dma.done.wait [#allocation3], 1024  }
  0x9c   :  { %2867 = vsyncadd [#allocation3], 4294966272 }
  0x9d   :  { %2868 = dma.done.wait [#allocation6], 272  }
  0x9e   :  { %2869 = vsyncadd [#allocation6], 4294967024 }
  0x9f   :  { %2870 = dma.done.wait [#allocation9], 272  }
  0xa0   :  { %2871 = vsyncadd [#allocation9], 4294967024 }
  0xa1   :  { %2872 = dma.done.wait [#allocation12], 272  }
  0xa2   :  { %2873 = vsyncadd [#allocation12], 4294967024 }
  0xa3   :  { %2874 = dma.done.wait [#allocation15], 1040  }
  0xa4   :  { %2875 = vsyncadd [#allocation15], 4294966256  ;;  %vm251_vm0 = vcmask 1044480   ;;  %vm252_vm1 = vcmask 1045504   ;;  %v2891_v0 = vmov 65535   ;;  %vm226_vm2 = vcmask 220160  }
  0xa5   :  { %v253_v1 = vsel %vm251_vm0, 4294967295, %v2891_v0  ;;  %v2369_v2 = vld [vmem:[#allocation5] sm:$0xff]   ;;  %v2370_v4 = vld [vmem:[#allocation5 + $0x8] sm:$0x3f]   ;;  %v2373_v8 = vld [vmem:[#allocation2 + $0x10] sm:$0xff]   ;;  %vm482_vm3 = vcmask 261120  }
  0xa6   :  { %v254_v3 = vsel %vm252_vm1, %v253_v1, 0  ;;  %2266 = vmatprep.subr.bf16.mxu0 %v2369_v2  ;;  %v2371_v5 = vld [vmem:[#allocation2] sm:$0xff]   ;;  %v2372_v7 = vld [vmem:[#allocation2 + $0x8] sm:$0xff]   ;;  %v2374_v9 = vld [vmem:[#allocation2 + $0x18] sm:$0xff]   ;;  %s2892_s8 = smov [#allocation17]  }
  0xa7   :  { %2267 = vmatpush3.bf16.msra.mxu0 %v2369_v2  ;;  %v256_v6 = vand.u32 %v2370_v4, %v254_v3  ;;  %2270 = vmatprep.mubr.msk.bf16.mxu0 %vm226_vm2, %v2371_v5  ;;  %v2375_v10 = vld [vmem:[#allocation2 + $0x20] sm:$0xff]   ;;  %v2376_v11 = vld [vmem:[#allocation2 + $0x28] sm:$0xff]   ;;  %v2377_v12 = vld [vmem:[#allocation2 + $0x30] sm:$0xff]   ;;  %s2176_s27 = sshll.u32 %s2892_s8, 4  ;;  %s2177_s27 = int_to_ptr.vmem [resolvable:$true] %s2176_s27 }
  0xa8   :  { %v2378_v13 = vld [vmem:[#allocation2 + $0x38] sm:$0xff]   ;;  %v3078_v16 = vld [vmem:[#allocation7] ss:$0 sm:$0xff]  ;;  %s2844_s2 = scalar_lea.vmem %s2177_s27, 32  ;;  %p2849_p3 = scmp.lt.s32.totalorder %s2177_s27, %s2177_s27 }
  0xa9   :  { %2268 = vmatprep.subr.bf16.mxu0 %v256_v6  ;;  %v2379_v14 = vld [vmem:[#allocation8] sm:$0xff]   ;;  %v2380_v15 = vld [vmem:[#allocation8 + $0x8] sm:$0xff]   ;;  %p2845_p2 = scmp.ne.s32.totalorder %s2177_s27, %s2844_s2  ;;  %p2850_p4 = scmp.lt.s32.totalorder %s2844_s2, %s2844_s2 }
  0xaa   :  { %2286 = vmatprep.subr.bf16.mxu1 %v2379_v14 }
  0xab   :  { %2269 = vmatpush3.bf16.msra.mxu0 %v256_v6  ;;  %2287 = vmatpush3.bf16.msra.mxu1 %v2379_v14  ;;  %p2851_p5 = por %p2850_p4, %p2849_p3 }
  0xac   :  { %2288 = vmatprep.subr.bf16.mxu1 %v2380_v15 }
  0xad   :  { %p2852_p6 = pnand %p2851_p5, %p2845_p2 }
  0xae   :  { %2271 = vmatmul.mubr.msk.bf16.vlgmr.msra.gmra.mrb[0].mxu0 %vm226_vm2, %v2372_v7 }
  0xaf   :  { %2274 = vmatprep.mubr.msk.bf16.mxu0 %vm226_vm2, %v2373_v8  ;;  %2289 = vmatpush3.bf16.msra.mxu1 %v2380_v15 }
  0xb6   :  { %2275 = vmatmul.mubr.msk.bf16.gmra.mrb[4].mxu0 %vm226_vm2, %v2374_v9 }
  0xb7   :  { %2278 = vmatprep.mubr.msk.bf16.mxu0 %vm226_vm2, %v2375_v10 }
  0xbe   :  { %2279 = vmatmul.mubr.msk.bf16.gmra.mrb[8].mxu0 %vm226_vm2, %v2376_v11 }
  0xbf   :  { %2282 = vmatprep.mubr.msk.bf16.mxu0 %vm226_vm2, %v2377_v12 }
  0xc6   :  { %2283 = vmatmul.mubr.msk.bf16.gmra.mrb[12].mxu0 %vm226_vm2, %v2378_v13 }
 0x181   :  { %v2272_v17 = vpop.f32.mrb[0].mxu0 }
 0x182   :  { %v3081_v18 = vadd.f32 %v2272_v17, %v3078_v16  ;;  %v292_v19 = vpop.f32.mrb[1].mxu0 }
 0x183   :  { %v3084_v20 = vadd.f32 %v3078_v16, %v292_v19  ;;  %v2273_v21 = vpop.f32.mrb[2].mxu0 }
 0x184   :  { %v357_v22 = vsub.f32 0.0, %v3081_v18  ;;  %v3088_v23 = vadd.f32 %v2273_v21, %v3078_v16  ;;  %v295_v24 = vpop.f32.mrb[3].mxu0 }
 0x185   :  { %v355_v25 = vsub.f32 0.0, %v3084_v20  ;;  %v3092_v26 = vadd.f32 %v3078_v16, %v295_v24 }
 0x186   :  { %v375_v27 = vmul.f32 1.442695, %v357_v22  ;;  %v358_v28 = vsub.f32 0.0, %v3088_v23 }
 0x187   :  { %v371_v29 = vmul.f32 1.442695, %v355_v25  ;;  %v356_v30 = vsub.f32 0.0, %v3092_v26 }
 0x188   :  { %2389 = vpow2.f32 %v375_v27  ;;  %v377_v31 = vmul.f32 1.442695, %v358_v28 }
 0x189   :  { %2391 = vpow2.f32 %v371_v29  ;;  %v373_v32 = vmul.f32 1.442695, %v356_v30  ;;  %v2276_v33 = vpop.f32.mrb[4].mxu0 }
 0x18a   :  { %2393 = vpow2.f32 %v377_v31  ;;  %v3097_v34 = vadd.f32 %v2276_v33, %v3078_v16  ;;  %v308_v35 = vpop.f32.mrb[5].mxu0 }
 0x18b   :  { %2395 = vpow2.f32 %v373_v32  ;;  %v3100_v36 = vadd.f32 %v3078_v16, %v308_v35  ;;  %v2277_v37 = vpop.f32.mrb[6].mxu0 }
 0x18c   :  { %v361_v38 = vsub.f32 0.0, %v3097_v34  ;;  %v3104_v39 = vadd.f32 %v2277_v37, %v3078_v16  ;;  %v311_v40 = vpop.f32.mrb[7].mxu0 }
 0x18d   :  { %v359_v41 = vsub.f32 0.0, %v3100_v36  ;;  %v3108_v42 = vadd.f32 %v3078_v16, %v311_v40 }
 0x18e   :  { %v383_v43 = vmul.f32 1.442695, %v361_v38  ;;  %v362_v44 = vsub.f32 0.0, %v3104_v39 }
 0x18f   :  { %v379_v45 = vmul.f32 1.442695, %v359_v41  ;;  %v360_v46 = vsub.f32 0.0, %v3108_v42 }
 0x190   :  { %2397 = vpow2.f32 %v383_v43  ;;  %v385_v47 = vmul.f32 1.442695, %v362_v44 }
 0x191   :  { %2399 = vpow2.f32 %v379_v45  ;;  %v381_v48 = vmul.f32 1.442695, %v360_v46  ;;  %v2280_v49 = vpop.f32.mrb[8].mxu0 }
 0x192   :  { %v2390_v50 = vpop.eup %2389  ;;  %2401 = vpow2.f32 %v385_v47  ;;  %v3113_v51 = vadd.f32 %v2280_v49, %v3078_v16  ;;  %v324_v52 = vpop.f32.mrb[9].mxu0 }
 0x193   :  { %v2392_v53 = vpop.eup %2391  ;;  %v405_v54 = vadd.f32 1.0, %v2390_v50  ;;  %2403 = vpow2.f32 %v381_v48  ;;  %v3116_v55 = vadd.f32 %v3078_v16, %v324_v52  ;;  %v2281_v56 = vpop.f32.mrb[10].mxu0 }
 0x194   :  { %v2394_v57 = vpop.eup %2393  ;;  %v403_v58 = vadd.f32 1.0, %v2392_v53  ;;  %v365_v59 = vsub.f32 0.0, %v3113_v51  ;;  %v3120_v60 = vadd.f32 %v2281_v56, %v3078_v16  ;;  %v327_v61 = vpop.f32.mrb[11].mxu0 }
 0x195   :  { %v2396_v62 = vpop.eup %2395  ;;  %2405 = vrcp.f32 %v405_v54  ;;  %v406_v63 = vadd.f32 1.0, %v2394_v57  ;;  %v363_v0 = vsub.f32 0.0, %v3116_v55  ;;  %v3124_v1 = vadd.f32 %v3078_v16, %v327_v61 }
 0x196   :  { %2407 = vrcp.f32 %v403_v58  ;;  %v404_v2 = vadd.f32 1.0, %v2396_v62  ;;  %v391_v3 = vmul.f32 1.442695, %v365_v59  ;;  %v366_v4 = vsub.f32 0.0, %v3120_v60 }
 0x197   :  { %2409 = vrcp.f32 %v406_v63  ;;  %v387_v5 = vmul.f32 1.442695, %v363_v0  ;;  %v364_v6 = vsub.f32 0.0, %v3124_v1 }
 0x198   :  { %2411 = vrcp.f32 %v404_v2  ;;  %v393_v7 = vmul.f32 1.442695, %v366_v4 }
 0x199   :  { %2413 = vpow2.f32 %v391_v3  ;;  %v389_v8 = vmul.f32 1.442695, %v364_v6  ;;  %v2284_v9 = vpop.f32.mrb[12].mxu0 }
 0x19a   :  { %v2398_v10 = vpop.eup %2397  ;;  %2415 = vpow2.f32 %v387_v5  ;;  %v3129_v11 = vadd.f32 %v2284_v9, %v3078_v16  ;;  %v340_v12 = vpop.f32.mrb[13].mxu0 }
 0x19b   :  { %v2400_v13 = vpop.eup %2399  ;;  %v409_v14 = vadd.f32 1.0, %v2398_v10  ;;  %2417 = vpow2.f32 %v393_v7  ;;  %v3132_v15 = vadd.f32 %v3078_v16, %v340_v12  ;;  %v2285_v17 = vpop.f32.mrb[14].mxu0 }
 0x19c   :  { %v2402_v19 = vpop.eup %2401  ;;  %v407_v21 = vadd.f32 1.0, %v2400_v13  ;;  %2419 = vpow2.f32 %v389_v8  ;;  %v369_v22 = vsub.f32 0.0, %v3129_v11  ;;  %v3136_v24 = vadd.f32 %v2285_v17, %v3078_v16  ;;  %v343_v25 = vpop.f32.mrb[15].mxu0 }
 0x19d   :  { %v2404_v27 = vpop.eup %2403  ;;  %2421 = vrcp.f32 %v409_v14  ;;  %v410_v28 = vadd.f32 1.0, %v2402_v19  ;;  %v367_v29 = vsub.f32 0.0, %v3132_v15  ;;  %v3140_v30 = vadd.f32 %v3078_v16, %v343_v25 }
 0x19e   :  { %2423 = vrcp.f32 %v407_v21  ;;  %v408_v31 = vadd.f32 1.0, %v2404_v27  ;;  %v399_v32 = vmul.f32 1.442695, %v369_v22  ;;  %v370_v33 = vsub.f32 0.0, %v3136_v24 }
 0x19f   :  { %v2406_v35 = vpop.eup %2405  ;;  %2425 = vrcp.f32 %v410_v28  ;;  %v395_v37 = vmul.f32 1.442695, %v367_v29  ;;  %v368_v38 = vsub.f32 0.0, %v3140_v30 }
 0x1a0   :  { %v2408_v40 = vpop.eup %2407  ;;  %2427 = vrcp.f32 %v408_v31  ;;  %v401_v41 = vmul.f32 1.442695, %v370_v33  ;;  %v437_v16 = vmul.f32 %v2406_v35, %v3081_v18  ;;  %v2381_v35 = vld [vmem:[#allocation14] sm:$0xff]  }
 0x1a1   :  { %v2410_v43 = vpop.eup %2409  ;;  %2429 = vpow2.f32 %v399_v32  ;;  %v397_v44 = vmul.f32 1.442695, %v368_v38  ;;  %v435_v48 = vmul.f32 %v2408_v40, %v3084_v20  ;;  %2338 = vmatprep.subr.bf16.mxu1 %v2381_v35  ;;  %2306 = vmatprep.subr.bf16.mxu0 %v2381_v35  ;;  %v700_v38 = vlaneseq  ;;  %v2387_v40 = vld [vmem:[#allocation14 + $0x30] sm:$0xff]  }
 0x1a2   :  { %v2412_v45 = vpop.eup %2411  ;;  %v438_v46 = vmul.f32 %v2410_v43, %v3088_v23  ;;  %2431 = vpow2.f32 %v395_v37  ;;  %v2382_v37 = vld [vmem:[#allocation14 + $0x8] sm:$0xff]   ;;  %2307 = vmatpush3.bf16.msra.mxu0 %v2381_v35  ;;  %v2388_v43 = vld [vmem:[#allocation14 + $0x38] sm:$0xff]  }
 0x1a3   :  { %v2414_v47 = vpop.eup %2413  ;;  %v436_v49 = vmul.f32 %v2412_v45, %v3092_v26  ;;  %2433 = vpow2.f32 %v401_v41  ;;  %2308 = vmatprep.subr.bf16.mxu0 %v2382_v37  ;;  %v3168_v41 = vshrl.u32 %v700_v38, 7  ;;  %v3171_v45 = vld [vmem:[#allocation10] ss:$0 sm:$0xff] }
 0x1a4   :  { %v2416_v50 = vpop.eup %2415  ;;  %v452_v52 = vpack.c.bf16 %v438_v46, %v437_v16  ;;  %v413_v53 = vadd.f32 1.0, %v2414_v47  ;;  %2435 = vpow2.f32 %v397_v44  ;;  %v3173_v16 = vld [vmem:[#allocation11] sm:$0xff] }
 0x1a5   :  { %v2418_v54 = vpop.eup %2417  ;;  %v411_v56 = vadd.f32 1.0, %v2416_v50  ;;  %v451_v57 = vpack.c.bf16 %v436_v49, %v435_v48  ;;  %v1286_v44 = vsub.s32 1, %v3168_v41  ;;  %v1475_v46 = vsub.s32 4, %v3168_v41 }
 0x1a6   :  { %v2420_v58 = vpop.eup %2419  ;;  %2437 = vrcp.f32 %v413_v53  ;;  %v414_v18 = vadd.f32 1.0, %v2418_v54  ;;  %2309 = vmatpush3.bf16.msra.mxu0 %v2382_v37  ;;  %v1647_v47 = vsub.s32 7, %v3168_v41  ;;  %v3184_v53 = vadd.s32 16, %v3168_v41 }
 0x1a7   :  { %v2422_v59 = vpop.eup %2421  ;;  %2439 = vrcp.f32 %v411_v56  ;;  %v412_v23 = vadd.f32 1.0, %v2420_v58  ;;  %2290 = vmatprep.mubr.msk.bf16.mxu1 %vm482_vm3, %v451_v57  ;;  %v3181_v50 = vrot.slane %v3173_v16, %v1286_v44  ;;  %v3187_v54 = vadd.s32 24, %v3168_v41 }
 0x1a8   :  { %v2424_v20 = vpop.eup %2423  ;;  %2441 = vrcp.f32 %v414_v18  ;;  %2291 = vmatmul.mubr.msk.bf16.vlgmr.msra.gmra.mrb[0].mxu1 %vm482_vm3, %v452_v52  ;;  %v441_v62 = vmul.f32 %v2422_v59, %v3097_v34  ;;  %v3190_v56 = vrot.slane %v3173_v16, %v1475_v46  ;;  %v3196_v18 = vadd.s32 32, %v3168_v41 }
 0x1a9   :  { %v2426_v26 = vpop.eup %2425  ;;  %2443 = vrcp.f32 %v412_v23  ;;  %v439_v2 = vmul.f32 %v2424_v20, %v3100_v36  ;;  %2346 = vmatpush3.bf16.msra.mxu1 %v2381_v35  ;;  %v3199_v59 = vrot.slane %v3173_v16, %v1647_v47  ;;  %vm4603_vm4 = vcmp.lt.s32.totalorder %v3168_v41, 1 }
 0x1aa   :  { %v2428_v61 = vpop.eup %2427  ;;  %v442_v63 = vmul.f32 %v2426_v26, %v3104_v39  ;;  %2339 = vmatprep.subr.bf16.mxu1 %v2382_v37  ;;  %4662 = vst [vmem:[#allocation24_spill] sm:$0xff] %v3196_v18  ;;  %v1234_v26 = vsub.s32 0, %v3168_v41  ;;  %vm4604_vm9 = vcmp.lt.s32.totalorder %v3168_v41, 7 }
 0x1ab   :  { %v2430_v0 = vpop.eup %2429  ;;  %v440_v3 = vmul.f32 %v2428_v61, %v3108_v42  ;;  %v1439_v61 = vsub.s32 3, %v3168_v41 }
 0x1ac   :  { %v2432_v4 = vpop.eup %2431  ;;  %v454_v5 = vpack.c.bf16 %v442_v63, %v441_v62  ;;  %v417_v6 = vadd.f32 1.0, %v2430_v0  ;;  %v1595_v0 = vsub.s32 6, %v3168_v41 }
 0x1ad   :  { %v2434_v7 = vpop.eup %2433  ;;  %v453_v8 = vpack.c.bf16 %v440_v3, %v439_v2  ;;  %v415_v9 = vadd.f32 1.0, %v2432_v4  ;;  %2347 = vmatpush3.bf16.msra.mxu1 %v2382_v37  ;;  %v3213_v3 = vadd.s32 40, %v3168_v41 }
 0x1ae   :  { %v2436_v10 = vpop.eup %2435  ;;  %2445 = vrcp.f32 %v417_v6  ;;  %v418_v12 = vadd.f32 1.0, %v2434_v7  ;;  %v4577_v6 = vand.u32 7, %v3184_v53  ;;  %v4576_v7 = vand.u32 7, %v3187_v54 }
 0x1af   :  { %2447 = vrcp.f32 %v415_v9  ;;  %v416_v13 = vadd.f32 1.0, %v2436_v10  ;;  %2294 = vmatprep.mubr.msk.bf16.mxu1 %vm482_vm3, %v453_v8  ;;  %4663 = vst [vmem:[#allocation25_spill] sm:$0xff] %v3213_v3  ;;  %v4578_v9 = vand.u32 7, %v3196_v18 }
 0x1b0   :  { %v2438_v34 = vpop.eup %2437  ;;  %2449 = vrcp.f32 %v418_v12  ;;  %2295 = vmatmul.mubr.msk.bf16.gmra.mrb[4].mxu1 %vm482_vm3, %v454_v5  ;;  %v1387_v12 = vsub.s32 2, %v3168_v41  ;;  %vm3333_vm5 = vcmp.ge.s32.totalorder %v4577_v6, 1  ;;  %vm3339_vm6 = vcmp.ge.s32.totalorder %v4576_v7, 1 }
 0x1b1   :  { %v2440_v36 = vpop.eup %2439  ;;  %2451 = vrcp.f32 %v416_v13  ;;  %v445_v14 = vmul.f32 %v2438_v34, %v3113_v51  ;;  %v3222_v34 = vrot.slane %v3173_v16, %v1234_v26  ;;  %vm3345_vm7 = vcmp.ge.s32.totalorder %v4578_v9, 1 }
 0x1b2   :  { %v2442_v39 = vpop.eup %2441  ;;  %v443_v19 = vmul.f32 %v2440_v36, %v3116_v55  ;;  %v3225_v36 = vrot.slane %v3173_v16, %v1439_v61 }
 0x1b3   :  { %v2444_v42 = vpop.eup %2443  ;;  %v446_v17 = vmul.f32 %v2442_v39, %v3120_v60  ;;  %v3228_v39 = vrot.slane %v3173_v16, %v1595_v0  ;;  %v1236_v37 = vmul.f32 0.0, %v3222_v34  ;;  %v3278_v0 = vadd.s32 88, %v3168_v41 }
 0x1b4   :  { %v444_v21 = vmul.f32 %v2444_v42, %v3124_v1 }
 0x1b5   :  { %v456_v22 = vpack.c.bf16 %v446_v17, %v445_v14  ;;  %v3355_v6 = vmul.f32 0.0, %v3228_v39 }
 0x1b6   :  { %v455_v25 = vpack.c.bf16 %v444_v21, %v443_v19 }
 0x1b7   :  { %4679 = vst [vmem:[#allocation35_spill] sm:$0xff] %v3355_v6  ;;  %v4696_v6 = vmov 0 }
 0x1b8   :  { %v2446_v27 = vpop.eup %2445  ;;  %2298 = vmatprep.mubr.msk.bf16.mxu1 %vm482_vm3, %v455_v25  ;;  %v3238_v25 = vadd.s32 56, %v3168_v41 }
 0x1b9   :  { %v2448_v28 = vpop.eup %2447  ;;  %2299 = vmatmul.mubr.msk.bf16.gmra.mrb[8].mxu1 %vm482_vm3, %v456_v22  ;;  %v449_v32 = vmul.f32 %v2446_v27, %v3129_v11  ;;  %v2383_v11 = vld [vmem:[#allocation14 + $0x10] sm:$0xff]   ;;  %v3235_v22 = vadd.s32 48, %v3168_v41 }
 0x1ba   :  { %v2450_v29 = vpop.eup %2449  ;;  %v447_v60 = vmul.f32 %v2448_v28, %v3132_v15  ;;  %2340 = vmatprep.subr.bf16.mxu1 %v2383_v11  ;;  %v2384_v15 = vld [vmem:[#allocation14 + $0x18] sm:$0xff]   ;;  %2310 = vmatprep.subr.bf16.mxu0 %v2383_v11  ;;  %4665 = vst [vmem:[#allocation27_spill] sm:$0xff] %v3238_v25 }
 0x1bb   :  { %v2452_v31 = vpop.eup %2451  ;;  %v450_v51 = vmul.f32 %v2450_v29, %v3136_v24  ;;  %2348 = vmatpush3.bf16.msra.mxu1 %v2383_v11  ;;  %2311 = vmatpush3.bf16.msra.mxu0 %v2383_v11  ;;  %v2385_v24 = vld [vmem:[#allocation14 + $0x20] sm:$0xff]   ;;  %4664 = vst [vmem:[#allocation26_spill] sm:$0xff] %v3235_v22  ;;  %v3244_v29 = vrot.slane %v3173_v16, %v1387_v12  ;;  %v1288_v11 = vmul.f32 0.0, %v3181_v50 }
 0x1bc   :  { %v448_v55 = vmul.f32 %v2452_v31, %v3140_v30  ;;  %2341 = vmatprep.subr.bf16.mxu1 %v2384_v15  ;;  %2312 = vmatprep.subr.bf16.mxu0 %v2384_v15  ;;  %v2386_v30 = vld [vmem:[#allocation14 + $0x28] sm:$0xff]   ;;  %v3247_v31 = vadd.s32 8, %v3168_v41 }
 0x1bd   :  { %v458_v33 = vpack.c.bf16 %v450_v51, %v449_v32  ;;  %v1389_v26 = vmul.f32 0.0, %v3244_v29 }
 0x1be   :  { %v457_v1 = vpack.c.bf16 %v448_v55, %v447_v60  ;;  %v3254_v55 = vadd.s32 64, %v3168_v41 }
 0x1bf   :  { %2349 = vmatpush3.bf16.msra.mxu1 %v2384_v15  ;;  %2313 = vmatpush3.bf16.msra.mxu0 %v2384_v15 }
 0x1c0   :  { %2302 = vmatprep.mubr.msk.bf16.mxu1 %vm482_vm3, %v457_v1  ;;  %2342 = vmatprep.subr.bf16.mxu1 %v2385_v24 }
 0x1c1   :  { %2303 = vmatmul.mubr.msk.bf16.gmra.mrb[12].mxu1 %vm482_vm3, %v458_v33  ;;  %2314 = vmatprep.subr.bf16.mxu0 %v2385_v24  ;;  %v3257_v33 = vadd.s32 72, %v3168_v41 }
 0x1c3   :  { %2350 = vmatpush3.bf16.msra.mxu1 %v2385_v24  ;;  %2315 = vmatpush3.bf16.msra.mxu0 %v2385_v24 }
 0x1c4   :  { %2343 = vmatprep.subr.bf16.mxu1 %v2386_v30  ;;  %2316 = vmatprep.subr.bf16.mxu0 %v2386_v30 }
 0x1c7   :  { %2351 = vmatpush3.bf16.msra.mxu1 %v2386_v30  ;;  %2317 = vmatpush3.bf16.msra.mxu0 %v2386_v30 }
 0x1c8   :  { %2344 = vmatprep.subr.bf16.mxu1 %v2387_v40  ;;  %2318 = vmatprep.subr.bf16.mxu0 %v2387_v40 }
 0x1cb   :  { %2352 = vmatpush3.bf16.msra.mxu1 %v2387_v40  ;;  %2319 = vmatpush3.bf16.msra.mxu0 %v2387_v40 }
 0x1cc   :  { %2345 = vmatprep.subr.bf16.mxu1 %v2388_v43  ;;  %2320 = vmatprep.subr.bf16.mxu0 %v2388_v43 }
 0x1cf   :  { %2353 = vmatpush3.bf16.msra.mxu1 %v2388_v43  ;;  %2321 = vmatpush3.bf16.msra.mxu0 %v2388_v43 }
 0x27b   :  { %v2292_v48 = vpop.f32.mrb[0].mxu1 }
 0x27c   :  { %v3178_v49 = vadd.f32 %v2292_v48, %v3171_v45  ;;  %v541_v52 = vpop.f32.mrb[1].mxu1  ;;  %v3363_v48 = vmul.f32 0.0, %v3199_v59 }
 0x27d   :  { %v3193_v57 = vadd.f32 %v3171_v45, %v541_v52  ;;  %v2293_v58 = vpop.f32.mrb[2].mxu1 }
 0x27e   :  { %v606_v23 = vsub.f32 0.0, %v3178_v49  ;;  %v3203_v20 = vadd.f32 %v2293_v58, %v3171_v45  ;;  %v544_v62 = vpop.f32.mrb[3].mxu1  ;;  %4681 = vst [vmem:[#allocation37_spill] sm:$0xff] %v3363_v48 }
 0x27f   :  { %v604_v63 = vsub.f32 0.0, %v3193_v57  ;;  %v3210_v2 = vadd.f32 %v3171_v45, %v544_v62 }
 0x280   :  { %v624_v4 = vmul.f32 1.442695, %v606_v23  ;;  %v607_v5 = vsub.f32 0.0, %v3203_v20  ;;  %v1304_v23 = vadd.f32 %v1288_v11, %v1236_v37 }
 0x281   :  { %v620_v8 = vmul.f32 1.442695, %v604_v63  ;;  %v605_v10 = vsub.f32 0.0, %v3210_v2  ;;  %v3275_v63 = vadd.s32 80, %v3168_v41 }
 0x282   :  { %2453 = vpow2.f32 %v624_v4  ;;  %v626_v13 = vmul.f32 1.442695, %v607_v5  ;;  %v3281_v4 = vadd.s32 96, %v3168_v41 }
 0x283   :  { %2455 = vpow2.f32 %v620_v8  ;;  %v622_v42 = vmul.f32 1.442695, %v605_v10  ;;  %v2296_v14 = vpop.f32.mrb[4].mxu1 }
 0x284   :  { %2457 = vpow2.f32 %v626_v13  ;;  %v3232_v19 = vadd.f32 %v2296_v14, %v3171_v45  ;;  %v557_v21 = vpop.f32.mrb[5].mxu1  ;;  %v1527_v13 = vsub.s32 5, %v3168_v41 }
 0x285   :  { %2459 = vpow2.f32 %v622_v42  ;;  %v3241_v27 = vadd.f32 %v3171_v45, %v557_v21  ;;  %v2297_v28 = vpop.f32.mrb[6].mxu1 }
 0x286   :  { %v610_v32 = vsub.f32 0.0, %v3232_v19  ;;  %v3251_v51 = vadd.f32 %v2297_v28, %v3171_v45  ;;  %v560_v60 = vpop.f32.mrb[7].mxu1 }
 0x287   :  { %v608_v1 = vsub.f32 0.0, %v3241_v27  ;;  %v3261_v35 = vadd.f32 %v3171_v45, %v560_v60  ;;  %v3294_v60 = vadd.s32 112, %v3168_v41 }
 0x288   :  { %v632_v15 = vmul.f32 1.442695, %v610_v32  ;;  %v611_v24 = vsub.f32 0.0, %v3251_v51  ;;  %v3291_v32 = vadd.s32 104, %v3168_v41 }
 0x289   :  { %v628_v40 = vmul.f32 1.442695, %v608_v1  ;;  %v609_v43 = vsub.f32 0.0, %v3261_v35  ;;  %4666 = vst [vmem:[#allocation28_spill] sm:$0xff] %v3294_v60 }
 0x28a   :  { %2461 = vpow2.f32 %v632_v15  ;;  %v634_v47 = vmul.f32 1.442695, %v611_v24 }
 0x28b   :  { %2463 = vpow2.f32 %v628_v40  ;;  %v630_v58 = vmul.f32 1.442695, %v609_v43 }
 0x28c   :  { %v2454_v61 = vpop.eup %2453  ;;  %2465 = vpow2.f32 %v634_v47  ;;  %v2300_v62 = vpop.f32.mrb[8].mxu1 }
 0x28d   :  { %v2456_v5 = vpop.eup %2455  ;;  %v654_v8 = vadd.f32 1.0, %v2454_v61  ;;  %2467 = vpow2.f32 %v630_v58  ;;  %v3284_v10 = vadd.f32 %v2300_v62, %v3171_v45  ;;  %v573_v12 = vpop.f32.mrb[9].mxu1  ;;  %v3306_v62 = vadd.s32 120, %v3168_v41 }
 0x28e   :  { %v2458_v42 = vpop.eup %2457  ;;  %v652_v14 = vadd.f32 1.0, %v2456_v5  ;;  %v3288_v21 = vadd.f32 %v3171_v45, %v573_v12  ;;  %v2301_v28 = vpop.f32.mrb[10].mxu1 }
 0x28f   :  { %v2460_v1 = vpop.eup %2459  ;;  %2469 = vrcp.f32 %v654_v8  ;;  %v655_v37 = vadd.f32 1.0, %v2458_v42  ;;  %v614_v11 = vsub.f32 0.0, %v3284_v10  ;;  %v3298_v15 = vadd.f32 %v2301_v28, %v3171_v45  ;;  %v576_v24 = vpop.f32.mrb[11].mxu1  ;;  %4667 = vst [vmem:[#allocation29_spill] sm:$0xff] %v3306_v62 }
 0x290   :  { %2471 = vrcp.f32 %v652_v14  ;;  %v653_v40 = vadd.f32 1.0, %v2460_v1  ;;  %v612_v43 = vsub.f32 0.0, %v3288_v21  ;;  %v3302_v47 = vadd.f32 %v3171_v45, %v576_v24 }
 0x291   :  { %2473 = vrcp.f32 %v655_v37  ;;  %v640_v58 = vmul.f32 1.442695, %v614_v11  ;;  %v615_v61 = vsub.f32 0.0, %v3298_v15  ;;  %v3308_v8 = vadd.f32 %v1389_v26, %v1304_v23 }
 0x292   :  { %2475 = vrcp.f32 %v653_v40  ;;  %v636_v5 = vmul.f32 1.442695, %v612_v43  ;;  %v613_v12 = vsub.f32 0.0, %v3302_v47  ;;  %v3316_v40 = vrot.slane %v3173_v16, %v1527_v13 }
 0x293   :  { %2477 = vpow2.f32 %v640_v58  ;;  %v642_v42 = vmul.f32 1.442695, %v615_v61 }
 0x294   :  { %v2462_v1 = vpop.eup %2461  ;;  %2479 = vpow2.f32 %v636_v5  ;;  %v2304_v11 = vpop.f32.mrb[12].mxu1  ;;  %4668 = vst [vmem:[#allocation30_spill] sm:$0xff] %v3316_v40  ;;  %v638_v37 = vmul.f32 1.442695, %v613_v12 }
 0x295   :  { %v2464_v23 = vpop.eup %2463  ;;  %v658_v26 = vadd.f32 1.0, %v2462_v1  ;;  %v3319_v43 = vadd.f32 %v2304_v11, %v3171_v45  ;;  %v589_v58 = vpop.f32.mrb[13].mxu1  ;;  %2481 = vpow2.f32 %v642_v42 }
 0x296   :  { %v2466_v14 = vpop.eup %2465  ;;  %v656_v5 = vadd.f32 1.0, %v2464_v23  ;;  %v3324_v44 = vadd.f32 %v3171_v45, %v589_v58  ;;  %v2305_v24 = vpop.f32.mrb[14].mxu1 }
 0x297   :  { %v2468_v16 = vpop.eup %2467  ;;  %2483 = vrcp.f32 %v658_v26  ;;  %v659_v13 = vadd.f32 1.0, %v2466_v14  ;;  %v618_v1 = vsub.f32 0.0, %v3319_v43  ;;  %v3329_v11 = vadd.f32 %v2305_v24, %v3171_v45  ;;  %v592_v61 = vpop.f32.mrb[15].mxu1 }
 0x298   :  { %4669 = vst [vmem:[#allocation31_spill] sm:$0xff] %v3324_v44  ;;  %v4675_v14 = vmov 0  ;;  %2485 = vrcp.f32 %v656_v5  ;;  %v657_v24 = vadd.f32 1.0, %v2468_v16  ;;  %v616_v23 = vsub.f32 0.0, %v3324_v44  ;;  %v3360_v16 = vld [vmem:[#allocation11 + $0x8] ss:$0 sm:$0xff] }
 0x299   :  { %4670 = vst [vmem:[#allocation32_spill] sm:$0xff] %v3329_v11  ;;  %v4676_v14 = vsel %vm3345_vm7, 4294967295, %v4675_v14  ;;  %v3351_v26 = vadd.f32 %v3171_v45, %v592_v61  ;;  %v2470_v58 = vpop.eup %2469  ;;  %2487 = vrcp.f32 %v659_v13  ;;  %v648_v28 = vmul.f32 1.442695, %v618_v1  ;;  %4680 = vst [vmem:[#allocation36_spill] sm:$0xff] %v3360_v16 }
 0x29a   :  { %4677 = vst [vmem:[#allocation33_spill] sm:$0xff] %v4676_v14  ;;  %v619_v7 = vsub.f32 0.0, %v3329_v11  ;;  %v2472_v52 = vpop.eup %2471  ;;  %v3358_v9 = vmul.f32 %v2470_v58, %v3178_v49  ;;  %2489 = vrcp.f32 %v657_v24  ;;  %v644_v5 = vmul.f32 1.442695, %v616_v23 }
 0x29b   :  { %4678 = vst [vmem:[#allocation34_spill] sm:$0xff] %v3351_v26  ;;  %v2474_v45 = vpop.eup %2473  ;;  %v3366_v61 = vmul.f32 %v2472_v52, %v3193_v57  ;;  %2491 = vpow2.f32 %v638_v37  ;;  %v3369_v1 = vmul.f32 0.0, %v3360_v16  ;;  %v617_v23 = vsub.f32 0.0, %v3351_v26 }
 0x29c   :  { %v650_v13 = vmul.f32 1.442695, %v619_v7  ;;  %v2476_v46 = vpop.eup %2475  ;;  %v3374_v24 = vmul.f32 %v3181_v50, %v3358_v9  ;;  %2493 = vpow2.f32 %v648_v28  ;;  %v3380_v57 = vmul.f32 %v3190_v56, %v3358_v9 }
 0x29d   :  { %4682 = vst [vmem:[#allocation38_spill] sm:$0xff] %v3366_v61  ;;  %4683 = vst [vmem:[#allocation39_spill] sm:$0xff] %v3369_v1  ;;  %v2478_v58 = vpop.eup %2477  ;;  %v3385_v52 = vmul.f32 %v3181_v50, %v3366_v61  ;;  %v3388_v49 = vmul.f32 %v2474_v45, %v3203_v20  ;;  %v3391_v28 = vmul.f32 %v2476_v46, %v3210_v2  ;;  %2495 = vpow2.f32 %v644_v5 }
 0x29e   :  { %4684 = vst [vmem:[#allocation40_spill] sm:$0xff] %v3380_v57  ;;  %v2480_v37 = vpop.eup %2479  ;;  %v662_v38 = vadd.f32 1.0, %v2478_v58  ;;  %v3396_v17 = vmul.f32 %v3190_v56, %v3366_v61  ;;  %2497 = vpow2.f32 %v650_v13  ;;  %v4688_v45 = vand.u32 7, %v3213_v3 }
 0x29f   :  { %4685 = vst [vmem:[#allocation41_spill] sm:$0xff] %v3385_v52  ;;  %4686 = vst [vmem:[#allocation42_spill] sm:$0xff] %v3391_v28  ;;  %v660_v7 = vadd.f32 1.0, %v2480_v37  ;;  %v2482_v1 = vpop.eup %2481  ;;  %v1170_v48 = vrot.slane %v3388_v49, 7  ;;  %v1292_v20 = vmul.f32 %v3181_v50, %v3388_v49  ;;  %v4689_v2 = vmov 0 }
 0x2a0   :  { %4687 = vst [vmem:[#allocation43_spill] sm:$0xff] %v3396_v17  ;;  %vm3403_vm8 = vcmp.ge.s32.totalorder %v4688_v45, 1  ;;  %v3407_v46 = vmul.f32 1.442695, %v617_v23  ;;  %v3411_v5 = vmul.f32 %v3199_v59, %v3358_v9  ;;  %v3416_v37 = vmul.f32 %v3190_v56, %v3388_v49 }
 0x2a1   :  { %v4690_v2 = vsel %vm3403_vm8, 4294967295, %v4689_v2  ;;  %v2484_v58 = vpop.eup %2483  ;;  %v3420_v30 = vmul.f32 %v3199_v59, %v3388_v49  ;;  %v4695_v23 = vand.u32 7, %v3238_v25  ;;  %v4699_v13 = vrot.slane %v3358_v9, 7 }
 0x2a2   :  { %4691 = vst [vmem:[#allocation44_spill] sm:$0xff] %v4690_v2  ;;  %4692 = vst [vmem:[#allocation45_spill] sm:$0xff] %v3411_v5  ;;  %v2486_v3 = vpop.eup %2485  ;;  %v1290_v5 = vmul.f32 %v3181_v50, %v3391_v28  ;;  %v4701_v45 = vand.u32 7, %v3235_v22  ;;  %v4702_v25 = vmov 0  ;;  %2499 = vrcp.f32 %v662_v38 }
 0x2a3   :  { %4693 = vst [vmem:[#allocation46_spill] sm:$0xff] %v3416_v37  ;;  %4694 = vst [vmem:[#allocation47_spill] sm:$0xff] %v3420_v30  ;;  %vm3426_vm10 = vcmp.ge.s32.totalorder %v4695_v23, 1  ;;  %v1196_v18 = vsel %vm4603_vm4, %v4699_v13, %v1170_v48  ;;  %v3437_v30 = vmul.f32 %v2484_v58, %v3232_v19  ;;  %v2488_v23 = vpop.eup %2487  ;;  %v4705_v19 = vrot.slane %v3391_v28, 7 }
 0x2a4   :  { %v4697_v6 = vsel %vm3426_vm10, 4294967295, %v4696_v6  ;;  %vm3441_vm11 = vcmp.ge.s32.totalorder %v4701_v45, 1  ;;  %v1220_v37 = vsel %vm3345_vm7, %v1196_v18, 0.0  ;;  %v1424_v13 = vsel %vm3339_vm6, %v1196_v18, 0.0  ;;  %v2490_v22 = vpop.eup %2489 }
 0x2a5   :  { %4698 = vst [vmem:[#allocation48_spill] sm:$0xff] %v4697_v6  ;;  %4700 = vst [vmem:[#allocation49_spill] sm:$0xff] %v3437_v30  ;;  %v4703_v25 = vsel %vm3441_vm11, 4294967295, %v4702_v25  ;;  %v1579_v57 = vsel %vm3333_vm5, %v1196_v18, 0.0  ;;  %v4706_v58 = vrot.slane %v3366_v61, 7  ;;  %v1240_v38 = vmul.f32 %v3222_v34, %v1220_v37  ;;  %v2492_v26 = vpop.eup %2491 }
 0x2a6   :  { %4704 = vst [vmem:[#allocation50_spill] sm:$0xff] %v4703_v25  ;;  %v3466_v18 = vmul.f32 %v3190_v56, %v3391_v28  ;;  %v3469_v40 = vmul.f32 %v3225_v36, %v1424_v13  ;;  %v2494_v52 = vpop.eup %2493  ;;  %v3480_v16 = vmul.f32 %v3190_v56, %v3437_v30  ;;  %v3484_v44 = vmul.f32 %v2488_v23, %v3251_v51 }
 0x2a7   :  { %v3457_v45 = vsel %vm4603_vm4, %v4706_v58, %v4705_v19  ;;  %v3472_v19 = vmul.f32 %v3228_v39, %v1579_v57  ;;  %v3476_v11 = vadd.f32 %v1292_v20, %v1240_v38  ;;  %v3490_v57 = vmul.f32 %v3181_v50, %v3437_v30  ;;  %v2496_v20 = vpop.eup %2495 }
 0x2a8   :  { %4707 = vst [vmem:[#allocation51_spill] sm:$0xff] %v3457_v45  ;;  %v1218_v17 = vsel %vm3333_vm5, %v3457_v45, 0.0  ;;  %4708 = vst [vmem:[#allocation52_spill] sm:$0xff] %v3466_v18  ;;  %v688_v18 = vmul.f32 %v2486_v3, %v3241_v27  ;;  %2501 = vrcp.f32 %v660_v7  ;;  %v4716_v3 = vand.u32 7, %v3247_v31  ;;  %v2498_v51 = vpop.eup %2497 }
 0x2a9   :  { %4709 = vst [vmem:[#allocation53_spill] sm:$0xff] %v3469_v40  ;;  %4710 = vst [vmem:[#allocation54_spill] sm:$0xff] %v3472_v19  ;;  %v1238_v58 = vmul.f32 %v3222_v34, %v1218_v17  ;;  %v3493_v17 = vmul.f32 %v2490_v22, %v3261_v35  ;;  %v4717_v27 = vmov 0  ;;  %v3507_v35 = vmul.f32 %v3190_v56, %v3484_v44 }
 0x2aa   :  { %4711 = vst [vmem:[#allocation55_spill] sm:$0xff] %v3476_v11  ;;  %4712 = vst [vmem:[#allocation56_spill] sm:$0xff] %v3480_v16  ;;  %v1171_v37 = vrot.slane %v688_v18, 7  ;;  %v1324_v16 = vrot.slane %v688_v18, 1  ;;  %v663_v11 = vadd.f32 1.0, %v2482_v1  ;;  %vm3498_vm12 = vcmp.ge.s32.totalorder %v4716_v3, 1 }
 0x2ab   :  { %4713 = vst [vmem:[#allocation57_spill] sm:$0xff] %v3484_v44  ;;  %v3486_v13 = vadd.f32 %v1290_v5, %v1238_v58  ;;  %4714 = vst [vmem:[#allocation58_spill] sm:$0xff] %v3490_v57  ;;  %v4718_v27 = vsel %vm3498_vm12, 4294967295, %v4717_v27  ;;  %v1293_v5 = vmul.f32 %v3181_v50, %v688_v18  ;;  %v4722_v7 = vrot.slane %v3388_v49, 1 }
 0x2ac   :  { %4715 = vst [vmem:[#allocation59_spill] sm:$0xff] %v3493_v17  ;;  %4719 = vst [vmem:[#allocation60_spill] sm:$0xff] %v4718_v27  ;;  %v3511_v1 = vsel %vm4603_vm4, %v1170_v48, %v1171_v37  ;;  %v3520_v3 = vmul.f32 %v3190_v56, %v688_v18  ;;  %v3530_v23 = vmul.f32 %v3199_v59, %v688_v18  ;;  %v2500_v38 = vpop.eup %2499  ;;  %v4730_v18 = vrot.slane %v3437_v30, 1 }
 0x2ad   :  { %4720 = vst [vmem:[#allocation61_spill] sm:$0xff] %v3507_v35  ;;  %4721 = vst [vmem:[#allocation62_spill] sm:$0xff] %v3511_v1  ;;  %v3517_v58 = vsel %vm4604_vm9, %v4722_v7, %v1324_v16  ;;  %v1221_v22 = vsel %vm3403_vm8, %v3511_v1, 0.0  ;;  %v1580_v48 = vsel %vm3339_vm6, %v3511_v1, 0.0  ;;  %v4726_v35 = vrot.slane %v3484_v44, 7 }
 0x2ae   :  { %4723 = vst [vmem:[#allocation63_spill] sm:$0xff] %v3517_v58  ;;  %4724 = vst [vmem:[#allocation64_spill] sm:$0xff] %v3520_v3  ;;  %v4727_v7 = vrot.slane %v3437_v30, 7  ;;  %v1241_v3 = vmul.f32 %v3222_v34, %v1221_v22  ;;  %v4729_v58 = vrot.slane %v3484_v44, 1  ;;  %v4735_v19 = vand.u32 7, %v3257_v33 }
 0x2af   :  { %4725 = vst [vmem:[#allocation65_spill] sm:$0xff] %v3530_v23  ;;  %v3568_v14 = vmul.f32 %v3228_v39, %v1580_v48  ;;  %2503 = vrcp.f32 %v663_v11  ;;  %vm4779_vm8 = vcmp.lt.s32.totalorder %v3168_v41, 7  ;;  %v4782_v6 = vrot.slane %v3484_v44, 7 }
 0x2b0   :  { %v3538_v57 = vsel %vm4603_vm4, %v4727_v7, %v4726_v35  ;;  %v3550_v23 = vsel %vm4604_vm9, %v4730_v18, %v4729_v58  ;;  %v4732_v7 = vand.u32 7, %v3254_v55  ;;  %vm3563_vm14 = vcmp.ge.s32.totalorder %v4735_v19, 1 }
 0x2b1   :  { %4728 = vst [vmem:[#allocation66_spill] sm:$0xff] %v3538_v57  ;;  %4731 = vst [vmem:[#allocation67_spill] sm:$0xff] %v3550_v23  ;;  %v4739_v18 = vrot.slane %v3493_v17, 7  ;;  %v1294_v35 = vmul.f32 %v3181_v50, %v3493_v17  ;;  %v4741_v19 = vand.u32 7, %v3247_v31  ;;  %v4742_v23 = vmov 0 }
 0x2b2   :  { %vm3557_vm13 = vcmp.ge.s32.totalorder %v4732_v7, 1  ;;  %4738 = vst [vmem:[#allocation68_spill] sm:$0xff] %v3568_v14  ;;  %v3587_v48 = vadd.f32 %v1293_v5, %v1241_v3  ;;  %v4747_v31 = vmov 0  ;;  %v4751_v5 = vmov 0 }
 0x2b3   :  { %v3577_v7 = vsel %vm4603_vm4, %v1171_v37, %v4739_v18  ;;  %vm3583_vm15 = vcmp.lt.s32.totalorder %v4741_v19, 7  ;;  %v4746_v18 = vand.u32 7, %v3184_v53  ;;  %v4750_v19 = vand.u32 7, %v3187_v54 }
 0x2b4   :  { %4740 = vst [vmem:[#allocation69_spill] sm:$0xff] %v3577_v7  ;;  %v4743_v23 = vsel %vm3583_vm15, 4294967295, %v4742_v23  ;;  %4745 = vst [vmem:[#allocation71_spill] sm:$0xff] %v3587_v48  ;;  %v1222_v58 = vsel %vm3441_vm11, %v3577_v7, 0.0  ;;  %v3611_v57 = vmul.f32 %v3190_v56, %v3493_v17  ;;  %v3614_v37 = vmul.f32 %v2500_v38, %v3284_v10 }
 0x2b5   :  { %4744 = vst [vmem:[#allocation70_spill] sm:$0xff] %v4743_v23  ;;  %vm3598_vm0 = vcmp.lt.s32.totalorder %v4746_v18, 7  ;;  %vm3604_vm1 = vcmp.lt.s32.totalorder %v4750_v19, 7  ;;  %v1242_v3 = vmul.f32 %v3222_v34, %v1222_v58  ;;  %v4755_v53 = vrot.slane %v3493_v17, 1 }
 0x2b6   :  { %v4748_v31 = vsel %vm3598_vm0, 4294967295, %v4747_v31  ;;  %v4752_v5 = vsel %vm3604_vm1, 4294967295, %v4751_v5  ;;  %4754 = vst [vmem:[#allocation74_spill] sm:$0xff] %v3611_v57  ;;  %v661_v54 = vadd.f32 1.0, %v2492_v26  ;;  %v666_v19 = vadd.f32 1.0, %v2494_v52  ;;  %v2502_v57 = vpop.eup %2501 }
 0x2b7   :  { %4749 = vst [vmem:[#allocation72_spill] sm:$0xff] %v4748_v31  ;;  %4753 = vst [vmem:[#allocation73_spill] sm:$0xff] %v4752_v5  ;;  %v3620_v18 = vsel %vm4604_vm9, %v1324_v16, %v4755_v53  ;;  %v664_v48 = vadd.f32 1.0, %v2496_v20  ;;  %v4757_v7 = vand.u32 7, %v3168_v41  ;;  %v4758_v58 = vmov 0 }
 0x2b8   :  { %4756 = vst [vmem:[#allocation75_spill] sm:$0xff] %v3620_v18  ;;  %v3628_v2 = vadd.f32 %v1294_v35, %v1242_v3  ;;  %v3633_v11 = vmul.f32 %v3181_v50, %v3614_v37  ;;  %v3638_v26 = vmul.f32 %v3190_v56, %v3614_v37  ;;  %v3641_v52 = vmul.f32 %v2502_v57, %v3288_v21 }
 0x2b9   :  { %vm3624_vm2 = vcmp.lt.s32.totalorder %v4757_v7, 7  ;;  %2505 = vrcp.f32 %v661_v54  ;;  %v667_v20 = vadd.f32 1.0, %v2498_v51  ;;  %v1422_v38 = vsel %vm3498_vm12, %v3457_v45, 0.0 }
 0x2ba   :  { %v4759_v58 = vsel %vm3624_vm2, 4294967295, %v4758_v58  ;;  %4761 = vst [vmem:[#allocation77_spill] sm:$0xff] %v3628_v2  ;;  %4762 = vst [vmem:[#allocation78_spill] sm:$0xff] %v3641_v52  ;;  %2507 = vrcp.f32 %v666_v19  ;;  %v3648_v35 = vmul.f32 %v3199_v59, %v3614_v37  ;;  %v4763_v7 = vrot.slane %v3358_v9, 7 }
 0x2bb   :  { %4760 = vst [vmem:[#allocation76_spill] sm:$0xff] %v4759_v58  ;;  %v4764_v3 = vrot.slane %v3391_v28, 7  ;;  %v1297_v57 = vmul.f32 %v3181_v50, %v3641_v52  ;;  %v1485_v54 = vmul.f32 %v3190_v56, %v3641_v52  ;;  %v4766_v19 = vand.u32 7, %v3275_v63 }
 0x2bc   :  { %v4769_v10 = vand.u32 7, %v3278_v0  ;;  %v4773_v21 = vmov 0  ;;  %2509 = vrcp.f32 %v664_v48  ;;  %v3683_v51 = vmul.f32 %v3225_v36, %v1422_v38 }
 0x2bd   :  { %v3656_v53 = vsel %vm4603_vm4, %v4764_v3, %v4763_v7  ;;  %vm3666_vm3 = vcmp.ge.s32.totalorder %v4766_v19, 1  ;;  %v4772_v3 = vand.u32 7, %v3281_v4  ;;  %v4777_v2 = vrot.slane %v3388_v49, 1 }
 0x2be   :  { %4765 = vst [vmem:[#allocation79_spill] sm:$0xff] %v3656_v53  ;;  %vm3672_vm4 = vcmp.ge.s32.totalorder %v4769_v10, 1  ;;  %4776 = vst [vmem:[#allocation81_spill] sm:$0xff] %v3683_v51  ;;  %v1219_v19 = vsel %vm3339_vm6, %v3656_v53, 0.0  ;;  %v4778_v10 = vrot.slane %v3358_v9, 1  ;;  %vm4783_vm7 = vcmp.lt.s32.totalorder %v3168_v41, 1 }
 0x2bf   :  { %vm3678_vm9 = vcmp.ge.s32.totalorder %v4772_v3, 1  ;;  %v4781_v3 = vrot.slane %v3641_v52, 7  ;;  %2511 = vrcp.f32 %v667_v20  ;;  %v1239_v38 = vmul.f32 %v3222_v34, %v1219_v19  ;;  %vm4786_vm6 = vmmov %vm4779_vm8 }
 0x2c0   :  { %v4774_v21 = vsel %vm3678_vm9, 4294967295, %v4773_v21  ;;  %v3694_v25 = vsel %vm4779_vm8, %v4778_v10, %v4777_v2  ;;  %v4784_v12 = vmov %v4778_v10  ;;  %v4785_v49 = vrot.slane %v3391_v28, 1 }
 0x2c1   :  { %4775 = vst [vmem:[#allocation80_spill] sm:$0xff] %v4774_v21  ;;  %4780 = vst [vmem:[#allocation82_spill] sm:$0xff] %v3694_v25  ;;  %v1191_v48 = vsel %vm4783_vm7, %v4782_v6, %v4781_v3  ;;  %2513 = vpow2.f32 %v3407_v46  ;;  %v4789_v20 = vrot.slane %v3366_v61, 1  ;;  %v4798_v14 = vrot.slane %v3614_v37, 7 }
 0x2c2   :  { %v3709_v17 = vsel %vm4786_vm6, %v4785_v49, %v4784_v12  ;;  %v1225_v2 = vsel %vm3563_vm14, %v1191_v48, 0.0  ;;  %v1429_v10 = vsel %vm3557_vm13, %v1191_v48, 0.0  ;;  %v4788_v6 = vmov %v4785_v49  ;;  %vm4790_vm7 = vmmov %vm4786_vm6  ;;  %v2504_v49 = vpop.eup %2503 }
 0x2c3   :  { %4787 = vst [vmem:[#allocation83_spill] sm:$0xff] %v3709_v17  ;;  %v3722_v9 = vsel %vm4790_vm7, %v4789_v20, %v4788_v6  ;;  %v1245_v19 = vmul.f32 %v3222_v34, %v1225_v2  ;;  %v1449_v3 = vmul.f32 %v3225_v36, %v1429_v10  ;;  %v1307_v12 = vadd.f32 %v3374_v24, %v1239_v38 }
 0x2c4   :  { %4791 = vst [vmem:[#allocation84_spill] sm:$0xff] %v3722_v9  ;;  %v1370_v48 = vsel %vm3583_vm15, %v3722_v9, 0.0  ;;  %v1371_v46 = vsel %vm3598_vm0, %v3709_v17, 0.0  ;;  %v1372_v6 = vsel %vm3604_vm1, %v3694_v25, 0.0  ;;  %v1423_v24 = vsel %vm3333_vm5, %v3656_v53, 0.0 }
 0x2c5   :  { %v3737_v20 = vmul.f32 %v3244_v29, %v1370_v48  ;;  %v3742_v38 = vadd.f32 %v1297_v57, %v1245_v19  ;;  %v1465_v2 = vadd.f32 %v1449_v3, %v3308_v8  ;;  %v3746_v10 = vmul.f32 %v2504_v49, %v3298_v15  ;;  %v2506_v57 = vpop.eup %2505 }
 0x2c6   :  { %v1391_v44 = vmul.f32 %v3244_v29, %v1371_v46  ;;  %v1392_v30 = vmul.f32 %v3244_v29, %v1372_v6  ;;  %v3751_v18 = vmul.f32 %v3225_v36, %v1423_v24  ;;  %v2508_v46 = vpop.eup %2507  ;;  %v3774_v42 = vmul.f32 %v2506_v57, %v3302_v47 }
 0x2c7   :  { %4792 = vst [vmem:[#allocation85_spill] sm:$0xff] %v3737_v20  ;;  %v3759_v19 = vadd.f32 %v1485_v54, %v1465_v2  ;;  %v1178_v15 = vrot.slane %v3746_v10, 7  ;;  %v1300_v3 = vmul.f32 %v3181_v50, %v3746_v10  ;;  %v1331_v49 = vrot.slane %v3746_v10, 1  ;;  %v2510_v53 = vpop.eup %2509 }
 0x2c8   :  { %4793 = vst [vmem:[#allocation86_spill] sm:$0xff] %v3751_v18  ;;  %v3767_v6 = vmul.f32 %v3190_v56, %v3746_v10  ;;  %v3771_v24 = vmul.f32 %v3199_v59, %v3746_v10  ;;  %v4794_v54 = vand.u32 7, %v3291_v32  ;;  %v3783_v48 = vadd.f32 %v1391_v44, %v3486_v13 }
 0x2c9   :  { %vm4799_vm8 = vcmp.lt.s32.totalorder %v3168_v41, 1  ;;  %v3790_v10 = vmul.f32 %v2508_v46, %v3319_v43  ;;  %v4800_v47 = vrot.slane %v3614_v37, 1  ;;  %v1176_v43 = vrot.slane %v3774_v42, 7 }
 0x2ca   :  { %vm3778_vm5 = vcmp.ge.s32.totalorder %v4794_v54, 1  ;;  %4797 = vst [vmem:[#allocation87_spill] sm:$0xff] %v3783_v48  ;;  %v1188_v28 = vsel %vm4799_vm8, %v4798_v14, %v1178_v15  ;;  %v3798_v54 = vadd.f32 %v1392_v30, %v1307_v12  ;;  %v4802_v46 = vand.u32 7, %v3294_v60 }
 0x2cb   :  { %v3796_v57 = vsel %vm4786_vm6, %v4800_v47, %v1331_v49  ;;  %v1228_v44 = vsel %vm3678_vm9, %v1188_v28, 0.0  ;;  %v1432_v13 = vsel %vm3672_vm4, %v1188_v28, 0.0  ;;  %v1587_v14 = vsel %vm3666_vm3, %v1188_v28, 0.0  ;;  %v2512_v47 = vpop.eup %2511 }
 0x2cc   :  { %4801 = vst [vmem:[#allocation88_spill] sm:$0xff] %v3798_v54  ;;  %vm3809_vm7 = vcmp.ge.s32.totalorder %v4802_v46, 1  ;;  %v4805_v30 = vand.u32 7, %v3306_v62  ;;  %v1248_v17 = vmul.f32 %v3222_v34, %v1228_v44  ;;  %v3821_v23 = vmul.f32 %v3225_v36, %v1432_v13  ;;  %v2514_v60 = vpop.eup %2513  ;;  %v4821_v54 = vld [vmem:[#allocation31_spill] sm:$0xff] }
 0x2cd   :  { %v3824_v28 = vmul.f32 %v3228_v39, %v1587_v14  ;;  %v1298_v46 = vmul.f32 %v3181_v50, %v3774_v42  ;;  %v4808_v9 = vrot.slane %v3641_v52, 7  ;;  %vm4809_vm6 = vcmp.lt.s32.totalorder %v3168_v41, 1 }
 0x2ce   :  { %vm3815_vm8 = vcmp.ge.s32.totalorder %v4805_v30, 1  ;;  %v1329_v62 = vrot.slane %v3774_v42, 1  ;;  %v3837_v44 = vmul.f32 %v3190_v56, %v3774_v42  ;;  %v4810_v14 = vand.u32 7, %v3168_v41 }
 0x2cf   :  { %v3832_v30 = vsel %vm4809_vm6, %v4808_v9, %v1176_v43  ;;  %v4813_v5 = vand.u32 7, %v3275_v63  ;;  %v3852_v9 = vadd.f32 %v1300_v3, %v1248_v17  ;;  %v4817_v63 = vand.u32 7, %v3257_v33  ;;  %v4825_v33 = vld [vmem:[#allocation32_spill] sm:$0xff] }
 0x2d0   :  { %vm3842_vm11 = vcmp.ge.s32.totalorder %v4810_v14, 1  ;;  %v1226_v25 = vsel %vm3666_vm3, %v3832_v30, 0.0  ;;  %v1430_v13 = vsel %vm3563_vm14, %v3832_v30, 0.0  ;;  %v3862_v14 = vmul.f32 %v3181_v50, %v3790_v10 }
 0x2d1   :  { %vm3848_vm10 = vcmp.lt.s32.totalorder %v4813_v5, 7  ;;  %vm3866_vm6 = vcmp.lt.s32.totalorder %v4817_v63, 7  ;;  %v1246_v17 = vmul.f32 %v3222_v34, %v1226_v25  ;;  %v3874_v40 = vmul.f32 %v3190_v56, %v3790_v10 }
 0x2d2   :  { %4816 = vst [vmem:[#allocation89_spill] sm:$0xff] %v3862_v14  ;;  %v3877_v51 = vmul.f32 %v2510_v53, %v4821_v54  ;;  %v4822_v18 = vand.u32 7, %v3278_v0  ;;  %v3886_v63 = vmul.f32 %v2512_v47, %v4825_v33  ;;  %v665_v48 = vadd.f32 1.0, %v2514_v60  ;;  %v4857_v33 = vld [vmem:[#allocation36_spill] sm:$0xff] }
 0x2d3   :  { %4820 = vst [vmem:[#allocation90_spill] sm:$0xff] %v3874_v40  ;;  %v4827_v25 = vrot.slane %v3614_v37, 7  ;;  %vm4828_vm2 = vcmp.lt.s32.totalorder %v3168_v41, 1  ;;  %v4829_v40 = vrot.slane %v3614_v37, 1  ;;  %vm4830_vm1 = vcmp.lt.s32.totalorder %v3168_v41, 7 }
 0x2d4   :  { %vm3881_vm15 = vcmp.lt.s32.totalorder %v4822_v18, 7  ;;  %4826 = vst [vmem:[#allocation31_spill] sm:$0xff] %v3886_v63  ;;  %v1314_v0 = vadd.f32 %v1298_v46, %v1246_v17  ;;  %v4651_v18 = vrot.slane %v3877_v51, 7  ;;  %v1301_v54 = vmul.f32 %v3181_v50, %v3877_v51 }
 0x2d5   :  { %v3892_v3 = vsel %vm4828_vm2, %v1176_v43, %v4827_v25  ;;  %v3898_v53 = vsel %vm4830_vm1, %v1329_v62, %v4829_v40  ;;  %v4650_v60 = vrot.slane %v3877_v51, 1  ;;  %v4831_v47 = vand.u32 7, %v3254_v55  ;;  %vm4835_vm1 = vmmov %vm4828_vm2 }
 0x2d6   :  { %v3912_v37 = vmul.f32 %v3190_v56, %v3877_v51  ;;  %v3916_v40 = vmul.f32 %v3199_v59, %v3877_v51  ;;  %v1182_v43 = vrot.slane %v3886_v63, 7  ;;  %v3924_v55 = vsel %vm4835_vm1, %v1178_v15, %v4651_v18 }
 0x2d7   :  { %vm3906_vm0 = vcmp.lt.s32.totalorder %v4831_v47, 7  ;;  %4836 = vst [vmem:[#allocation91_spill] sm:$0xff] %v3924_v55  ;;  %vm4837_vm2 = vcmp.lt.s32.totalorder %v3168_v41, 7  ;;  %v3934_v25 = vmul.f32 %v3190_v56, %v3886_v63  ;;  %v3938_v47 = vmul.f32 %v3199_v59, %v3886_v63 }
 0x2d8   :  { %4834 = vst [vmem:[#allocation32_spill] sm:$0xff] %v3912_v37  ;;  %v3930_v17 = vsel %vm4837_vm2, %v1331_v49, %v4650_v60  ;;  %v1229_v46 = vsel %vm3778_vm5, %v3924_v55, 0.0  ;;  %v1588_v49 = vsel %vm3672_vm4, %v3924_v55, 0.0  ;;  %v4840_v60 = vrot.slane %v3790_v10, 7  ;;  %vm4843_vm2 = vmmov %vm4835_vm1 }
 0x2d9   :  { %4838 = vst [vmem:[#allocation92_spill] sm:$0xff] %v3934_v25  ;;  %4839 = vst [vmem:[#allocation93_spill] sm:$0xff] %v3938_v47  ;;  %v1249_v47 = vmul.f32 %v3222_v34, %v1229_v46  ;;  %v3957_v25 = vmul.f32 %v3228_v39, %v1588_v49  ;;  %v4842_v20 = vrot.slane %v3366_v61, 7  ;;  %v4844_v37 = vrot.slane %v3886_v63, 1 }
 0x2da   :  { %v3953_v18 = vsel %vm4835_vm1, %v4840_v60, %v1182_v43  ;;  %v4845_v55 = vrot.slane %v3790_v10, 1  ;;  %vm4846_vm9 = vcmp.lt.s32.totalorder %v3168_v41, 7  ;;  %2515 = vrcp.f32 %v665_v48 }
 0x2db   :  { %4841 = vst [vmem:[#allocation94_spill] sm:$0xff] %v3953_v18  ;;  %v1199_v15 = vsel %vm4843_vm2, %v1182_v43, %v4842_v20  ;;  %v1436_v49 = vsel %vm3815_vm8, %v3953_v18, 0.0  ;;  %v3981_v43 = vadd.f32 %v1301_v54, %v1249_v47  ;;  %v4847_v61 = vrot.slane %v3641_v52, 1  ;;  %v4848_v47 = vld [vmem:[#allocation41_spill] sm:$0xff] }
 0x2dc   :  { %v3969_v21 = vsel %vm4846_vm9, %v4845_v55, %v4844_v37  ;;  %v1217_v60 = vsel %vm3498_vm12, %v1199_v15, 0.0  ;;  %v1421_v46 = vsel %vm3842_vm11, %v1199_v15, 0.0  ;;  %v3986_v55 = vmul.f32 %v3225_v36, %v1436_v49 }
 0x2dd   :  { %v1237_v63 = vmul.f32 %v3222_v34, %v1217_v60  ;;  %v1441_v37 = vmul.f32 %v3225_v36, %v1421_v46  ;;  %v1227_v15 = vsel %vm3672_vm4, %v3892_v3, 0.0  ;;  %v1343_v27 = vsel %vm4846_vm9, %v4847_v61, %v1329_v62 }
 0x2de   :  { %v1379_v54 = vsel %vm3848_vm10, %v3898_v53, 0.0  ;;  %v1247_v48 = vmul.f32 %v3222_v34, %v1227_v15  ;;  %v1378_v7 = vsel %vm3866_vm6, %v1343_v27, 0.0  ;;  %v1380_v49 = vsel %vm3881_vm15, %v3796_v57, 0.0 }
 0x2df   :  { %v3999_v60 = vadd.f32 %v4848_v47, %v1237_v63  ;;  %v4002_v46 = vadd.f32 %v1441_v37, %v3308_v8  ;;  %v1398_v62 = vmul.f32 %v3244_v29, %v1378_v7  ;;  %v1399_v61 = vmul.f32 %v3244_v29, %v1379_v54 }
 0x2e0   :  { %v1431_v63 = vsel %vm3666_vm3, %v3892_v3, 0.0  ;;  %v1315_v8 = vadd.f32 %v3633_v11, %v1247_v48  ;;  %v1400_v37 = vmul.f32 %v3244_v29, %v1380_v49  ;;  %v1450_v15 = vmul.f32 %v3225_v36, %v1430_v13  ;;  %v4849_v48 = vld [vmem:[#allocation30_spill] sm:$0xff] }
 0x2e1   :  { %v1451_v47 = vmul.f32 %v3225_v36, %v1431_v63  ;;  %v1414_v20 = vadd.f32 %v1398_v62, %v3742_v38  ;;  %v1415_v52 = vadd.f32 %v1399_v61, %v1314_v0  ;;  %v1517_v7 = vsel %vm3906_vm0, %v1343_v27, 0.0 }
 0x2e2   :  { %v1518_v54 = vsel %vm3866_vm6, %v3898_v53, 0.0  ;;  %v1416_v16 = vadd.f32 %v1400_v37, %v1315_v8  ;;  %v1519_v11 = vsel %vm3848_vm10, %v3796_v57, 0.0  ;;  %v1520_v13 = vsel %vm3881_vm15, %v3930_v17, 0.0 }
 0x2e3   :  { %v1537_v49 = vmul.f32 %v4849_v48, %v1517_v7  ;;  %v1466_v38 = vadd.f32 %v1450_v15, %v1414_v20  ;;  %v1467_v0 = vadd.f32 %v1451_v47, %v1415_v52  ;;  %v1538_v62 = vmul.f32 %v4849_v48, %v1518_v54  ;;  %v4877_v54 = vld [vmem:[#allocation43_spill] sm:$0xff] }
 0x2e4   :  { %v1539_v27 = vmul.f32 %v4849_v48, %v1519_v11  ;;  %v1468_v61 = vadd.f32 %v3821_v23, %v1416_v16  ;;  %v1540_v63 = vmul.f32 %v4849_v48, %v1520_v13  ;;  %v1585_v37 = vsel %vm3557_vm13, %v3832_v30, 0.0  ;;  %v2516_v1 = vpop.eup %2515 }
 0x2e5   :  { %v1553_v8 = vadd.f32 %v1537_v49, %v3759_v19  ;;  %v1502_v18 = vadd.f32 %v3837_v44, %v1466_v38  ;;  %v1503_v7 = vadd.f32 %v3638_v26, %v1467_v0  ;;  %v1586_v52 = vsel %vm3563_vm14, %v3892_v3, 0.0  ;;  %vm4861_vm14 = vmmov %vm4846_vm9  ;;  %v4875_v26 = vld [vmem:[#allocation88_spill] sm:$0xff] }
 0x2e6   :  { %v1605_v20 = vmul.f32 %v3228_v39, %v1585_v37  ;;  %v1504_v23 = vadd.f32 %v3767_v6, %v1468_v61  ;;  %v1606_v15 = vmul.f32 %v3228_v39, %v1586_v52  ;;  %v1657_v19 = vmul.f32 %v3199_v59, %v3774_v42 }
 0x2e7   :  { %v1705_v22 = vsel %vm3906_vm0, %v3898_v53, 0.0  ;;  %v4850_v30 = vand.u32 7, %v3281_v4  ;;  %v1554_v44 = vadd.f32 %v1538_v62, %v1502_v18  ;;  %v1555_v3 = vadd.f32 %v1539_v27, %v1503_v7  ;;  %v4856_v53 = vld [vmem:[#allocation34_spill] sm:$0xff]  ;;  %v4094_v7 = vld [vmem:[#allocation13] ss:$0 sm:$0xff]  ;;  %vm4863_vm0 = vmmov %vm4835_vm1 }
 0x2e8   :  { %v1621_v47 = vadd.f32 %v1605_v20, %v1553_v8  ;;  %v1706_v6 = vsel %vm3866_vm6, %v3796_v57, 0.0  ;;  %v4853_v42 = vand.u32 7, %v3291_v32  ;;  %v4069_v4 = vmul.f32 %v2516_v1, %v4856_v53 }
 0x2e9   :  { %vm4055_vm4 = vcmp.lt.s32.totalorder %v4850_v30, 7  ;;  %v1725_v16 = vmul.f32 %v4857_v33, %v1705_v22  ;;  %v1726_v11 = vmul.f32 %v4857_v33, %v1706_v6  ;;  %v1556_v18 = vadd.f32 %v1540_v63, %v1504_v23 }
 0x2ea   :  { %vm4064_vm13 = vcmp.lt.s32.totalorder %v4853_v42, 7  ;;  %v1622_v13 = vadd.f32 %v1606_v15, %v1554_v44  ;;  %v1673_v49 = vadd.f32 %v1657_v19, %v1621_v47  ;;  %v1623_v38 = vadd.f32 %v3824_v28, %v1555_v3 }
 0x2eb   :  { %v1707_v32 = vsel %vm3848_vm10, %v3930_v17, 0.0  ;;  %v1180_v57 = vrot.slane %v4069_v4, 7  ;;  %v1302_v5 = vmul.f32 %v3181_v50, %v4069_v4  ;;  %v1333_v0 = vrot.slane %v4069_v4, 1  ;;  %vm4859_vm10 = vmmov %vm4835_vm1 }
 0x2ec   :  { %v1490_v62 = vmul.f32 %v3190_v56, %v4069_v4  ;;  %v1674_v27 = vadd.f32 %v3648_v35, %v1622_v13  ;;  %v1741_v61 = vadd.f32 %v1725_v16, %v1673_v49  ;;  %v1624_v63 = vadd.f32 %v3957_v25, %v1556_v18 }
 0x2ed   :  { %v1675_v28 = vadd.f32 %v3771_v24, %v1623_v38  ;;  %v4858_v31 = vrot.slane %v3877_v51, 7  ;;  %v4860_v37 = vrot.slane %v3877_v51, 1  ;;  %v1727_v56 = vmul.f32 %v4857_v33, %v1707_v32 }
 0x2ee   :  { %v4862_v35 = vrot.slane %v3790_v10, 7  ;;  %v1742_v51 = vadd.f32 %v1726_v11, %v1674_v27  ;;  %v4108_v20 = vadd.f32 %v4094_v7, %v1741_v61  ;;  %v1676_v15 = vadd.f32 %v3916_v40, %v1624_v63  ;;  %v4866_v27 = vld [vmem:[#allocation80_spill] sm:$0xff]  ;;  %v4868_v61 = vld [vmem:[#allocation91_spill] sm:$0xff] }
 0x2ef   :  { %v1186_v8 = vsel %vm4859_vm10, %v4858_v31, %v1180_v57  ;;  %v1339_v50 = vsel %vm4861_vm14, %v4860_v37, %v1333_v0  ;;  %v1743_v22 = vadd.f32 %v1727_v56, %v1675_v28  ;;  %v4864_v40 = vrot.slane %v3790_v10, 1 }
 0x2f0   :  { %v4101_v25 = vsel %vm4863_vm0, %v1180_v57, %v4862_v35  ;;  %v1230_v24 = vsel %vm3809_vm7, %v1186_v8, 0.0  ;;  %v1434_v52 = vsel %vm3778_vm5, %v1186_v8, 0.0  ;;  %v1708_v19 = vsel %vm3881_vm15, %v1339_v50, 0.0  ;;  %vm4865_vm15 = vmmov %vm4846_vm9 }
 0x2f1   :  { %v1250_v23 = vmul.f32 %v3222_v34, %v1230_v24  ;;  %v4115_v30 = vadd.f32 %v4094_v7, %v1742_v51  ;;  %v1780_v1 = vsub.f32 0.0, %v4108_v20  ;;  %v1728_v44 = vmul.f32 %v4857_v33, %v1708_v19 }
 0x2f2   :  { %v1231_v3 = vsel %vm3815_vm8, %v4101_v25, 0.0  ;;  %v4125_v6 = vadd.f32 %v4094_v7, %v1743_v22  ;;  %v4134_v42 = vsel %vm4865_vm15, %v1333_v0, %v4864_v40  ;;  %v1381_v12 = vsel %vm4055_vm4, %v3930_v17, 0.0  ;;  %v4870_v22 = vld [vmem:[#allocation32_spill] sm:$0xff] }
 0x2f3   :  { %v4122_v47 = vadd.f32 %v1302_v5, %v1250_v23  ;;  %v4128_v14 = vmul.f32 %v3222_v34, %v1231_v3  ;;  %v1781_v53 = vsub.f32 0.0, %v4115_v30  ;;  %v1804_v16 = vmul.f32 1.442695, %v1780_v1 }
 0x2f4   :  { %v1744_v11 = vadd.f32 %v1728_v44, %v1676_v15  ;;  %v1782_v18 = vsub.f32 0.0, %v4125_v6  ;;  %v1382_v13 = vsel %vm4064_vm13, %v1339_v50, 0.0  ;;  %v1401_v49 = vmul.f32 %v3244_v29, %v1381_v12 }
 0x2f5   :  { %v1435_v38 = vsel %vm3809_vm7, %v4101_v25, 0.0  ;;  %2517 = vpow2.f32 %v1804_v16  ;;  %v1806_v32 = vmul.f32 1.442695, %v1781_v53  ;;  %v1402_v5 = vmul.f32 %v3244_v29, %v1382_v13  ;;  %v4872_v13 = vld [vmem:[#allocation87_spill] sm:$0xff] }
 0x2f6   :  { %v4148_v57 = vadd.f32 %v4094_v7, %v1744_v11  ;;  %v1808_v0 = vmul.f32 1.442695, %v1782_v18  ;;  %v1417_v17 = vadd.f32 %v1401_v49, %v3852_v9  ;;  %vm4867_vm3 = vnez %v4866_v27  ;;  %v4871_v11 = vld [vmem:[#allocation85_spill] sm:$0xff]  ;;  %v4873_v49 = vld [vmem:[#allocation86_spill] sm:$0xff] }
 0x2f7   :  { %v4869_v63 = vsel %vm4867_vm3, %v4868_v61, 0.0  ;;  %v1454_v31 = vmul.f32 %v3225_v36, %v1434_v52  ;;  %2519 = vpow2.f32 %v1806_v32  ;;  %v1418_v56 = vadd.f32 %v1402_v5, %v3981_v43  ;;  %v4874_v5 = vld [vmem:[#allocation81_spill] sm:$0xff] }
 0x2f8   :  { %v1453_v28 = vmul.f32 %v3225_v36, %v4869_v63  ;;  %v1783_v37 = vsub.f32 0.0, %v4148_v57  ;;  %v1521_v35 = vsel %vm4055_vm4, %v1339_v50, 0.0  ;;  %2521 = vpow2.f32 %v1808_v0 }
 0x2f9   :  { %v1522_v9 = vsel %vm4064_vm13, %v4134_v42, 0.0  ;;  %v1541_v51 = vmul.f32 %v4849_v48, %v1521_v35  ;;  %v1470_v15 = vadd.f32 %v1454_v31, %v1418_v56  ;;  %v1589_v19 = vsel %vm4867_vm3, %v1186_v8, 0.0  ;;  %v4880_v56 = vld [vmem:[#allocation72_spill] sm:$0xff] }
 0x2fa   :  { %v1469_v24 = vadd.f32 %v1453_v28, %v1417_v17  ;;  %v1810_v23 = vmul.f32 1.442695, %v1783_v37  ;;  %v1542_v52 = vmul.f32 %v4849_v48, %v1522_v9  ;;  %v1590_v50 = vsel %vm3778_vm5, %v4101_v25, 0.0  ;;  %v4876_v17 = vld [vmem:[#allocation53_spill] sm:$0xff]  ;;  %v4879_v37 = vld [vmem:[#allocation82_spill] sm:$0xff] }
 0x2fb   :  { %v1609_v1 = vmul.f32 %v3228_v39, %v1589_v19  ;;  %v1661_v44 = vmul.f32 %v3199_v59, %v4069_v4  ;;  %v1506_v3 = vadd.f32 %v1490_v62, %v1470_v15  ;;  %v1610_v40 = vmul.f32 %v3228_v39, %v1590_v50  ;;  %v4883_v9 = vld [vmem:[#allocation73_spill] sm:$0xff] }
 0x2fc   :  { %v1505_v43 = vadd.f32 %v4870_v22, %v1469_v24  ;;  %2523 = vpow2.f32 %v1810_v23  ;;  %v1662_v53 = vmul.f32 %v3199_v59, %v3790_v10  ;;  %v1709_v8 = vsel %vm4055_vm4, %v4134_v42, 0.0  ;;  %v4882_v24 = vld [vmem:[#allocation63_spill] sm:$0xff]  ;;  %v4886_v22 = vld [vmem:[#allocation46_spill] sm:$0xff] }
 0x2fd   :  { %v1710_v2 = vsel %vm4064_vm13, %v3969_v21, 0.0  ;;  %v1406_v12 = vadd.f32 %v4871_v11, %v3999_v60  ;;  %v1558_v4 = vadd.f32 %v1542_v52, %v1506_v3  ;;  %v1729_v62 = vmul.f32 %v4857_v33, %v1709_v8  ;;  %v4878_v60 = vld [vmem:[#allocation40_spill] sm:$0xff]  ;;  %v4891_v8 = vld [vmem:[#allocation70_spill] sm:$0xff]  ;;  %vm4935_vm13 = vmmov %vm4863_vm0 }
 0x2fe   :  { %v1557_v16 = vadd.f32 %v1541_v51, %v1505_v43  ;;  %v1730_v18 = vmul.f32 %v4857_v33, %v1710_v2  ;;  %v1459_v10 = vadd.f32 %v4873_v49, %v4872_v13  ;;  %v1460_v27 = vadd.f32 %v4876_v17, %v4875_v26  ;;  %v4885_v52 = vld [vmem:[#allocation52_spill] sm:$0xff]  ;;  %v4893_v2 = vld [vmem:[#allocation83_spill] sm:$0xff] }
 0x2ff   :  { %v1458_v0 = vadd.f32 %v4874_v5, %v1406_v12  ;;  %v1493_v61 = vadd.f32 %v4877_v54, %v4002_v46  ;;  %v2518_v63 = vpop.eup %2517  ;;  %v1626_v28 = vadd.f32 %v1610_v40, %v1558_v4  ;;  %vm4881_vm5 = vnez %v4880_v56  ;;  %v4889_v3 = vld [vmem:[#allocation84_spill] sm:$0xff] }
 0x300   :  { %v1625_v32 = vadd.f32 %v1609_v1, %v1557_v16  ;;  %v1495_v31 = vadd.f32 %v4878_v60, %v1459_v10  ;;  %v1511_v35 = vsel %vm4881_vm5, %v4879_v37, 0.0  ;;  %vm4884_vm8 = vnez %v4883_v9  ;;  %v4887_v1 = vld [vmem:[#allocation76_spill] sm:$0xff]  ;;  %v4900_v60 = vld [vmem:[#allocation29_spill] sm:$0xff] }
 0x301   :  { %v1512_v51 = vsel %vm4884_vm8, %v4882_v24, 0.0  ;;  %v1828_v23 = vadd.f32 1.0, %v2518_v63  ;;  %v1494_v19 = vadd.f32 %v4885_v52, %v1458_v0  ;;  %v1496_v43 = vadd.f32 %v4886_v22, %v1460_v27  ;;  %v2520_v50 = vpop.eup %2519  ;;  %v4895_v26 = vld [vmem:[#allocation28_spill] sm:$0xff] }
 0x302   :  { %v1677_v15 = vadd.f32 %v1661_v44, %v1625_v32  ;;  %v1678_v46 = vadd.f32 %v1662_v53, %v1626_v28  ;;  %vm4888_vm6 = vnez %v4887_v1  ;;  %vm4892_vm1 = vnez %v4891_v8  ;;  %v2522_v4 = vpop.eup %2521  ;;  %v4899_v28 = vld [vmem:[#allocation51_spill] sm:$0xff] }
 0x303   :  { %v4890_v40 = vsel %vm4888_vm6, %v4889_v3, 0.0  ;;  %v4894_v11 = vsel %vm4892_vm1, %v4893_v2, 0.0  ;;  %v1531_v44 = vmul.f32 %v4849_v48, %v1511_v35  ;;  %v1829_v13 = vadd.f32 1.0, %v2520_v50  ;;  %v4906_v50 = vld [vmem:[#allocation42_spill] sm:$0xff] }
 0x304   :  { %v1529_v16 = vmul.f32 %v4849_v48, %v4890_v40  ;;  %v1530_v12 = vmul.f32 %v4849_v48, %v4894_v11  ;;  %2525 = vrcp.f32 %v1828_v23  ;;  %v1745_v49 = vadd.f32 %v1729_v62, %v1677_v15  ;;  %v4904_v23 = vld [vmem:[#allocation79_spill] sm:$0xff]  ;;  %v4912_v15 = vld [vmem:[#allocation65_spill] sm:$0xff] }
 0x305   :  { %v1532_v53 = vmul.f32 %v4849_v48, %v1512_v51  ;;  %v1830_v10 = vadd.f32 1.0, %v2522_v4  ;;  %v1746_v32 = vadd.f32 %v1730_v18, %v1678_v46  ;;  %v4896_v17 = vand.u32 7, %v4895_v26  ;;  %v4931_v18 = vld [vmem:[#allocation49_spill] sm:$0xff] }
 0x306   :  { %v1545_v5 = vadd.f32 %v1529_v16, %v1493_v61  ;;  %v1546_v0 = vadd.f32 %v1530_v12, %v1494_v19  ;;  %2527 = vrcp.f32 %v1829_v13  ;;  %v4224_v54 = vadd.f32 %v4094_v7, %v1745_v49  ;;  %v2524_v61 = vpop.eup %2523 }
 0x307   :  { %vm4219_vm2 = vcmp.lt.s32.totalorder %v4896_v17, 7  ;;  %v1547_v63 = vadd.f32 %v1531_v44, %v1495_v31  ;;  %v1577_v62 = vsel %vm3842_vm11, %v4899_v28, 0.0  ;;  %v4901_v35 = vand.u32 7, %v4900_v60  ;;  %v4908_v17 = vld [vmem:[#allocation54_spill] sm:$0xff]  ;;  %v4910_v28 = vld [vmem:[#allocation75_spill] sm:$0xff]  ;;  %vm4918_vm11 = vmmov %vm4861_vm14 }
 0x308   :  { %2529 = vrcp.f32 %v1830_v10  ;;  %v4236_v51 = vadd.f32 %v4094_v7, %v1746_v32  ;;  %v1578_v52 = vsel %vm3498_vm12, %v4904_v23, 0.0  ;;  %v1597_v31 = vmul.f32 %v3228_v39, %v1577_v62  ;;  %vm4940_vm10 = vmmov %vm4918_vm11 }
 0x309   :  { %vm4231_vm9 = vcmp.lt.s32.totalorder %v4901_v35, 7  ;;  %v1831_v19 = vadd.f32 1.0, %v2524_v61  ;;  %v1784_v58 = vsub.f32 0.0, %v4224_v54  ;;  %v1598_v22 = vmul.f32 %v3228_v39, %v1578_v52 }
 0x30a   :  { %v1649_v46 = vmul.f32 %v3199_v59, %v4906_v50  ;;  %v1785_v3 = vsub.f32 0.0, %v4236_v51  ;;  %v1613_v40 = vadd.f32 %v1597_v31, %v1545_v5  ;;  %v1697_v16 = vsel %vm4888_vm6, %v4893_v2, 0.0  ;;  %v4907_v5 = vld [vmem:[#allocation45_spill] sm:$0xff]  ;;  %v4909_v2 = vld [vmem:[#allocation68_spill] sm:$0xff]  ;;  %v4914_v50 = vld [vmem:[#allocation38_spill] sm:$0xff] }
 0x30b   :  { %v1698_v11 = vsel %vm4892_vm1, %v4879_v37, 0.0  ;;  %2531 = vrcp.f32 %v1831_v19  ;;  %v1812_v12 = vmul.f32 1.442695, %v1784_v58  ;;  %v1614_v44 = vadd.f32 %v1598_v22, %v1546_v0  ;;  %v4913_v31 = vld [vmem:[#allocation89_spill] sm:$0xff] }
 0x30c   :  { %v1717_v4 = vmul.f32 %v4857_v33, %v1697_v16  ;;  %v1814_v13 = vmul.f32 1.442695, %v1785_v3  ;;  %v1665_v49 = vadd.f32 %v1649_v46, %v1613_v40  ;;  %v1718_v10 = vmul.f32 %v4857_v33, %v1698_v11  ;;  %v4916_v3 = vld [vmem:[#allocation31_spill] sm:$0xff] }
 0x30d   :  { %v1548_v32 = vadd.f32 %v1532_v53, %v1496_v43  ;;  %2533 = vpow2.f32 %v1812_v12  ;;  %v1666_v26 = vadd.f32 %v4907_v5, %v1614_v44  ;;  %v1615_v1 = vadd.f32 %v4908_v17, %v1547_v63  ;;  %v4911_v43 = vld [vmem:[#allocation47_spill] sm:$0xff] }
 0x30e   :  { %v1699_v8 = vsel %vm4881_vm5, %v4882_v24, 0.0  ;;  %2535 = vpow2.f32 %v1814_v13  ;;  %v1733_v37 = vadd.f32 %v1717_v4, %v1665_v49  ;;  %v1700_v62 = vsel %vm4884_vm8, %v4910_v28, 0.0  ;;  %v2526_v60 = vpop.eup %2525  ;;  %v4919_v13 = vld [vmem:[#allocation24_spill] sm:$0xff]  ;;  %vm4973_vm8 = vmmov %vm4940_vm10 }
 0x30f   :  { %v1616_v0 = vadd.f32 %v4909_v2, %v1548_v32  ;;  %v1734_v35 = vadd.f32 %v1718_v10, %v1666_v26  ;;  %v1667_v53 = vadd.f32 %v4911_v43, %v1615_v1  ;;  %v1719_v61 = vmul.f32 %v4857_v33, %v1699_v8  ;;  %v4923_v32 = vld [vmem:[#allocation25_spill] sm:$0xff] }
 0x310   :  { %v1720_v63 = vmul.f32 %v4857_v33, %v1700_v62  ;;  %v1860_v23 = vmul.f32 %v2526_v60, %v4108_v20  ;;  %v4269_v56 = vadd.f32 %v4094_v7, %v1733_v37  ;;  %v1319_v19 = vadd.f32 %v4913_v31, %v4128_v14  ;;  %v2528_v9 = vpop.eup %2527 }
 0x311   :  { %v1668_v52 = vadd.f32 %v4912_v15, %v1616_v0  ;;  %v4275_v58 = vadd.f32 %v4094_v7, %v1734_v35  ;;  %v1735_v22 = vadd.f32 %v1719_v61, %v1667_v53  ;;  %v4915_v46 = vrot.slane %v4914_v50, 1 }
 0x312   :  { %v4917_v40 = vrot.slane %v4916_v3, 1  ;;  %v1383_v16 = vsel %vm4219_vm2, %v4134_v42, 0.0  ;;  %v2530_v11 = vpop.eup %2529  ;;  %v1861_v12 = vmul.f32 %v2528_v9, %v4115_v30  ;;  %v1772_v14 = vsub.f32 0.0, %v4269_v56  ;;  %v4928_v3 = vld [vmem:[#allocation92_spill] sm:$0xff] }
 0x313   :  { %v1736_v44 = vadd.f32 %v1720_v63, %v1668_v52  ;;  %v1384_v4 = vsel %vm4231_vm9, %v3969_v21, 0.0  ;;  %v4920_v49 = vand.u32 7, %v4919_v13  ;;  %v4924_v5 = vand.u32 7, %v4923_v32 }
 0x314   :  { %v1352_v20 = vsel %vm4918_vm11, %v4917_v40, %v4915_v46  ;;  %v1862_v30 = vmul.f32 %v2530_v11, %v4125_v6  ;;  %v1773_v26 = vsub.f32 0.0, %v4275_v58  ;;  %v4306_v17 = vadd.f32 %v4094_v7, %v1735_v22  ;;  %v4929_v11 = vld [vmem:[#allocation94_spill] sm:$0xff] }
 0x315   :  { %vm4293_vm12 = vcmp.lt.s32.totalorder %v4920_v49, 7  ;;  %vm4299_vm4 = vcmp.lt.s32.totalorder %v4924_v5, 7  ;;  %v1403_v1 = vmul.f32 %v3244_v29, %v1383_v16  ;;  %v1872_v8 = vpack.c.bf16 %v1861_v12, %v1860_v23  ;;  %v2532_v62 = vpop.eup %2531 }
 0x316   :  { %v1788_v37 = vmul.f32 1.442695, %v1772_v14  ;;  %v4310_v2 = vadd.f32 %v4094_v7, %v1736_v44  ;;  %v1404_v0 = vmul.f32 %v3244_v29, %v1384_v4  ;;  %v1790_v60 = vmul.f32 1.442695, %v1773_v26  ;;  %v4933_v4 = vld [vmem:[#allocation59_spill] sm:$0xff] }
 0x317   :  { %v1774_v35 = vsub.f32 0.0, %v4306_v17  ;;  %v1419_v6 = vadd.f32 %v1403_v1, %v4122_v47  ;;  %v1455_v43 = vmul.f32 %v3225_v36, %v1435_v38  ;;  %2330 = vmatprep.mubr.bf16.mxu1 %v1872_v8  ;;  %v1863_v53 = vmul.f32 %v2532_v62, %v4148_v57  ;;  %v2534_v23 = vpop.eup %2533  ;;  %v4927_v57 = vld [vmem:[#allocation90_spill] sm:$0xff] }
 0x318   :  { %2537 = vpow2.f32 %v1788_v37  ;;  %v1775_v61 = vsub.f32 0.0, %v4310_v2  ;;  %v1420_v63 = vadd.f32 %v1404_v0, %v1319_v19  ;;  %v1523_v47 = vsel %vm4219_vm2, %v3969_v21, 0.0  ;;  %v2536_v31 = vpop.eup %2535  ;;  %v4941_v0 = vld [vmem:[#allocation35_spill] sm:$0xff] }
 0x319   :  { %2539 = vpow2.f32 %v1790_v60  ;;  %v1792_v15 = vmul.f32 1.442695, %v1774_v35  ;;  %v1471_v52 = vadd.f32 %v1455_v43, %v1419_v6  ;;  %v1873_v9 = vpack.c.bf16 %v1863_v53, %v1862_v30  ;;  %v4936_v30 = vld [vmem:[#allocation48_spill] sm:$0xff]  ;;  %v4942_v43 = vld [vmem:[#allocation50_spill] sm:$0xff] }
 0x31a   :  { %v1832_v25 = vadd.f32 1.0, %v2534_v23  ;;  %v1794_v22 = vmul.f32 1.442695, %v1775_v61  ;;  %v1472_v38 = vadd.f32 %v3986_v55, %v1420_v63  ;;  %v1833_v50 = vadd.f32 1.0, %v2536_v31  ;;  %v4944_v61 = vld [vmem:[#allocation33_spill] sm:$0xff] }
 0x31b   :  { %2541 = vpow2.f32 %v1792_v15  ;;  %v1507_v46 = vadd.f32 %v4927_v57, %v1471_v52  ;;  %v1524_v19 = vsel %vm4231_vm9, %v1352_v20, 0.0  ;;  %2331 = vmatmul.mubr.bf16.vlgmr.msra.gmra.mrb[16].mxu1 %v1873_v9  ;;  %v1543_v16 = vmul.f32 %v4849_v48, %v1523_v47  ;;  %v4948_v15 = vld [vmem:[#allocation44_spill] sm:$0xff]  ;;  %v4950_v52 = vld [vmem:[#allocation69_spill] sm:$0xff] }
 0x31c   :  { %2543 = vrcp.f32 %v1832_v25  ;;  %v1508_v40 = vadd.f32 %v4928_v3, %v1472_v38  ;;  %v1544_v21 = vmul.f32 %v4849_v48, %v1524_v19  ;;  %v4930_v55 = vsel %vm3809_vm7, %v4929_v11, 0.0  ;;  %v4952_v9 = vld [vmem:[#allocation93_spill] sm:$0xff] }
 0x31d   :  { %2545 = vrcp.f32 %v1833_v50  ;;  %v1611_v12 = vmul.f32 %v3228_v39, %v4930_v55  ;;  %v1711_v14 = vsel %vm4219_vm2, %v1352_v20, 0.0  ;;  %v4932_v44 = vrot.slane %v4931_v18, 7  ;;  %v4954_v50 = vld [vmem:[#allocation55_spill] sm:$0xff]  ;;  %v4956_v55 = vld [vmem:[#allocation26_spill] sm:$0xff] }
 0x31e   :  { %v4934_v13 = vrot.slane %v4933_v4, 7  ;;  %2547 = vpow2.f32 %v1794_v22  ;;  %v1559_v32 = vadd.f32 %v1543_v16, %v1507_v46  ;;  %v1560_v5 = vadd.f32 %v1544_v21, %v1508_v40  ;;  %v4953_v22 = vld [vmem:[#allocation37_spill] sm:$0xff]  ;;  %v4955_v40 = vld [vmem:[#allocation71_spill] sm:$0xff] }
 0x31f   :  { %v1731_v45 = vmul.f32 %v4857_v33, %v1711_v14  ;;  %vm4937_vm7 = vnez %v4936_v30  ;;  %v4938_v27 = vrot.slane %v4931_v18, 1  ;;  %v4939_v20 = vrot.slane %v4933_v4, 1 }
 0x320   :  { %v4345_v49 = vsel %vm4935_vm13, %v4934_v13, %v4932_v44  ;;  %v1373_v8 = vsel %vm4293_vm12, %v4882_v24, 0.0  ;;  %v1374_v33 = vsel %vm4299_vm4, %v4910_v28, 0.0  ;;  %v1627_v37 = vadd.f32 %v1611_v12, %v1559_v32  ;;  %v4946_v24 = vld [vmem:[#allocation62_spill] sm:$0xff]  ;;  %v4960_v32 = vld [vmem:[#allocation39_spill] sm:$0xff] }
 0x321   :  { %v1223_v26 = vsel %vm4937_vm7, %v4345_v49, 0.0  ;;  %v4357_v1 = vsel %vm4940_vm10, %v4939_v20, %v4938_v27  ;;  %v1628_v62 = vadd.f32 %v4941_v0, %v1560_v5  ;;  %v1393_v35 = vmul.f32 %v3244_v29, %v1373_v8 }
 0x322   :  { %v4367_v60 = vmul.f32 %v3222_v34, %v1223_v26  ;;  %v1394_v6 = vmul.f32 %v3244_v29, %v1374_v33  ;;  %vm4943_vm14 = vnez %v4942_v43  ;;  %vm4945_vm0 = vnez %v4944_v61  ;;  %v2538_v31 = vpop.eup %2537  ;;  %v4961_v26 = vld [vmem:[#allocation27_spill] sm:$0xff] }
 0x323   :  { %v1427_v53 = vsel %vm4943_vm14, %v4345_v49, 0.0  ;;  %v4947_v63 = vsel %vm4945_vm0, %v4946_v24, 0.0  ;;  %vm4949_vm15 = vnez %v4948_v15  ;;  %v1679_v25 = vadd.f32 %v4952_v9, %v1627_v37  ;;  %v2540_v19 = vpop.eup %2539 }
 0x324   :  { %v1445_v23 = vmul.f32 %v3225_v36, %v4947_v63  ;;  %v4951_v47 = vsel %vm4949_vm15, %v4950_v52, 0.0  ;;  %v1680_v38 = vadd.f32 %v4953_v22, %v1628_v62  ;;  %v1409_v57 = vadd.f32 %v1393_v35, %v4954_v50 }
 0x325   :  { %v1446_v34 = vmul.f32 %v3225_v36, %v4951_v47  ;;  %v1513_v46 = vsel %vm4293_vm12, %v4910_v28, 0.0  ;;  %v1820_v3 = vadd.f32 1.0, %v2538_v31  ;;  %v1410_v16 = vadd.f32 %v1394_v6, %v4955_v40  ;;  %v2542_v8 = vpop.eup %2541  ;;  %v4965_v47 = vld [vmem:[#allocation64_spill] sm:$0xff]  ;;  %v4966_v31 = vld [vmem:[#allocation74_spill] sm:$0xff] }
 0x326   :  { %v1514_v21 = vsel %vm4299_vm4, %v4357_v1, 0.0  ;;  %v1533_v11 = vmul.f32 %v4849_v48, %v1513_v46  ;;  %v4957_v12 = vand.u32 7, %v4956_v55  ;;  %v1821_v44 = vadd.f32 1.0, %v2540_v19  ;;  %v2544_v35 = vpop.eup %2543 }
 0x327   :  { %v1747_v13 = vadd.f32 %v1731_v45, %v1679_v25  ;;  %v1748_v28 = vadd.f32 %v4960_v32, %v1680_v38  ;;  %v1461_v5 = vadd.f32 %v1445_v23, %v1409_v57  ;;  %v4962_v27 = vand.u32 7, %v4961_v26  ;;  %v2546_v63 = vpop.eup %2545 }
 0x328   :  { %vm4397_vm3 = vcmp.lt.s32.totalorder %v4957_v12, 7  ;;  %2549 = vrcp.f32 %v1820_v3  ;;  %v1462_v33 = vadd.f32 %v1446_v34, %v1410_v16  ;;  %v1534_v37 = vmul.f32 %v4849_v48, %v1514_v21 }
 0x329   :  { %vm4404_vm5 = vcmp.lt.s32.totalorder %v4962_v27, 7  ;;  %v1581_v62 = vsel %vm4945_vm0, %v4950_v52, 0.0  ;;  %2551 = vrcp.f32 %v1821_v44  ;;  %v1822_v45 = vadd.f32 1.0, %v2542_v8  ;;  %v2548_v52 = vpop.eup %2547  ;;  %v4967_v44 = vld [vmem:[#allocation67_spill] sm:$0xff]  ;;  %v4968_v8 = vld [vmem:[#allocation58_spill] sm:$0xff] }
 0x32a   :  { %v4413_v6 = vadd.f32 %v4094_v7, %v1747_v13  ;;  %v4416_v24 = vadd.f32 %v4094_v7, %v1748_v28  ;;  %v1864_v23 = vmul.f32 %v2544_v35, %v4224_v54  ;;  %v1497_v34 = vadd.f32 %v4965_v47, %v1461_v5  ;;  %v2645_v5 = vld [vmem:[#allocation11 + $0x8] ss:$0 sm:$0xff] }
 0x32b   :  { %v1498_v9 = vadd.f32 %v4966_v31, %v1462_v33  ;;  %v1582_v61 = vsel %vm4949_vm15, %v4345_v49, 0.0  ;;  %v1865_v25 = vmul.f32 %v2546_v63, %v4236_v51  ;;  %2553 = vrcp.f32 %v1822_v45  ;;  %v4969_v33 = vld [vmem:[#allocation78_spill] sm:$0xff] }
 0x32c   :  { %v1786_v38 = vsub.f32 0.0, %v4413_v6  ;;  %v1787_v50 = vsub.f32 0.0, %v4416_v24  ;;  %v1823_v57 = vadd.f32 1.0, %v2548_v52  ;;  %v1549_v46 = vadd.f32 %v1533_v11, %v1497_v34 }
 0x32d   :  { %v1550_v19 = vadd.f32 %v1534_v37, %v1498_v9  ;;  %v1601_v54 = vmul.f32 %v3228_v39, %v1581_v62  ;;  %v1874_v3 = vpack.c.bf16 %v1865_v25, %v1864_v23  ;;  %v1602_v21 = vmul.f32 %v3228_v39, %v1582_v61  ;;  %v4971_v62 = vld [vmem:[#allocation57_spill] sm:$0xff] }
 0x32e   :  { %v1816_v40 = vmul.f32 1.442695, %v1786_v38  ;;  %v1818_v16 = vmul.f32 1.442695, %v1787_v50  ;;  %2555 = vrcp.f32 %v1823_v57  ;;  %v1653_v51 = vmul.f32 %v3199_v59, %v4933_v4  ;;  %v4974_v25 = vld [vmem:[#allocation77_spill] sm:$0xff] }
 0x32f   :  { %v1617_v15 = vadd.f32 %v1601_v54, %v1549_v46  ;;  %v1654_v55 = vmul.f32 %v3199_v59, %v4931_v18  ;;  %2334 = vmatprep.mubr.bf16.mxu1 %v1874_v3  ;;  %v1618_v12 = vadd.f32 %v1602_v21, %v1550_v19  ;;  %v1701_v11 = vsel %vm4293_vm12, %v4357_v1, 0.0 }
 0x330   :  { %2557 = vpow2.f32 %v1816_v40  ;;  %v1702_v13 = vsel %vm4299_vm4, %v4967_v44, 0.0  ;;  %v1721_v26 = vmul.f32 %v2645_v5, %v1701_v11  ;;  %v1311_v18 = vadd.f32 %v4968_v8, %v4367_v60 }
 0x331   :  { %2559 = vpow2.f32 %v1818_v16  ;;  %v1669_v28 = vadd.f32 %v1653_v51, %v1617_v15  ;;  %v1722_v27 = vmul.f32 %v2645_v5, %v1702_v13  ;;  %v1670_v4 = vadd.f32 %v1654_v55, %v1618_v12 }
 0x332   :  { %v4970_v37 = vrot.slane %v4969_v33, 1  ;;  %v4972_v35 = vrot.slane %v4971_v62, 1  ;;  %v1375_v42 = vsel %vm4397_vm3, %v4357_v1, 0.0  ;;  %v2550_v45 = vpop.eup %2549  ;;  %v1376_v23 = vsel %vm4404_vm5, %v4967_v44, 0.0 }
 0x333   :  { %v1737_v63 = vadd.f32 %v1721_v26, %v1669_v28  ;;  %v1395_v47 = vmul.f32 %v3244_v29, %v1375_v42  ;;  %v1447_v60 = vmul.f32 %v3225_v36, %v1427_v53  ;;  %v2552_v41 = vpop.eup %2551  ;;  %v1852_v34 = vmul.f32 %v2550_v45, %v4269_v56  ;;  %v4975_v56 = vld [vmem:[#allocation66_spill] sm:$0xff] }
 0x334   :  { %v1344_v10 = vsel %vm4973_vm8, %v4972_v35, %v4970_v37  ;;  %v1738_v31 = vadd.f32 %v1722_v27, %v1670_v4  ;;  %v1396_v1 = vmul.f32 %v3244_v29, %v1376_v23  ;;  %v1515_v9 = vsel %vm4397_vm3, %v4967_v44, 0.0  ;;  %v4978_v44 = vld [vmem:[#allocation61_spill] sm:$0xff] }
 0x335   :  { %v1853_v61 = vmul.f32 %v2552_v41, %v4275_v58  ;;  %v4466_v52 = vadd.f32 %v4094_v7, %v1737_v63  ;;  %v1411_v38 = vadd.f32 %v1395_v47, %v4974_v25  ;;  %v1516_v49 = vsel %vm4404_vm5, %v1344_v10, 0.0  ;;  %v2554_v53 = vpop.eup %2553 }
 0x336   :  { %v4976_v50 = vsel %vm4937_vm7, %v4975_v56, 0.0  ;;  %v4477_v57 = vadd.f32 %v4094_v7, %v1738_v31  ;;  %v1412_v46 = vadd.f32 %v1396_v1, %v1311_v18  ;;  %v1854_v3 = vmul.f32 %v2554_v53, %v4306_v17 }
 0x337   :  { %v1448_v29 = vmul.f32 %v3225_v36, %v4976_v50  ;;  %v1868_v58 = vpack.c.bf16 %v1853_v61, %v1852_v34  ;;  %v1776_v19 = vsub.f32 0.0, %v4466_v52  ;;  %v1463_v54 = vadd.f32 %v1447_v60, %v1411_v38  ;;  %v4977_v36 = vld [vmem:[#allocation56_spill] sm:$0xff] }
 0x338   :  { %v1777_v20 = vsub.f32 0.0, %v4477_v57  ;;  %v1703_v30 = vsel %vm4397_vm3, %v1344_v10, 0.0  ;;  %v2556_v16 = vpop.eup %2555  ;;  %v1535_v51 = vmul.f32 %v4849_v48, %v1515_v9  ;;  %v1536_v17 = vmul.f32 %v4849_v48, %v1516_v49 }
 0x339   :  { %v1464_v40 = vadd.f32 %v1448_v29, %v1412_v46  ;;  %2322 = vmatprep.mubr.bf16.mxu0 %v1868_v58  ;;  %v1796_v21 = vmul.f32 1.442695, %v1776_v19  ;;  %v1499_v15 = vadd.f32 %v4977_v36, %v1463_v54  ;;  %v1855_v12 = vmul.f32 %v2556_v16, %v4310_v2  ;;  %v4505_v19 = vld [vmem:[#allocation16] ss:$0 sm:$0xff] }
 0x33a   :  { %v2558_v55 = vpop.eup %2557  ;;  %v1798_v11 = vmul.f32 1.442695, %v1777_v20  ;;  %v4979_v27 = vsel %vm4943_vm14, %v4975_v56, 0.0  ;;  %v1655_v2 = vmul.f32 %v3199_v59, %v4971_v62  ;;  %v1723_v10 = vmul.f32 %v2645_v5, %v1703_v30 }
 0x33b   :  { %v1500_v13 = vadd.f32 %v4978_v44, %v1464_v40  ;;  %v2560_v28 = vpop.eup %2559  ;;  %v1834_v26 = vadd.f32 1.0, %v2558_v55  ;;  %2561 = vpow2.f32 %v1796_v21  ;;  %v1551_v14 = vadd.f32 %v1535_v51, %v1499_v15 }
 0x33c   :  { %v1603_v4 = vmul.f32 %v3228_v39, %v4979_v27  ;;  %v1869_v8 = vpack.c.bf16 %v1855_v12, %v1854_v3  ;;  %v1835_v18 = vadd.f32 1.0, %v2560_v28  ;;  %2563 = vpow2.f32 %v1798_v11 }
 0x33d   :  { %v1552_v33 = vadd.f32 %v1536_v17, %v1500_v13  ;;  %2565 = vrcp.f32 %v1834_v26  ;;  %vm2166_vm6 = vcmask 1040384  }
 0x33e   :  { %v1619_v37 = vadd.f32 %v1603_v4, %v1551_v14  ;;  %2323 = vmatmul.mubr.bf16.vlgmr.msra.gmra.mrb[16].mxu0 %v1869_v8  ;;  %2567 = vrcp.f32 %v1835_v18 }
 0x33f   :  { %v1620_v48 = vadd.f32 %v4941_v0, %v1552_v33 }
 0x340   :  { %v1671_v35 = vadd.f32 %v1655_v2, %v1619_v37 }
 0x341   :  { %v1672_v43 = vadd.f32 %v4953_v22, %v1620_v48 }
 0x342   :  { %v1739_v42 = vadd.f32 %v1723_v10, %v1671_v35 }
 0x343   :  { %v1740_v39 = vadd.f32 %v4960_v32, %v1672_v43 }
 0x344   :  { %v1762_v45 = vadd.f32 %v4094_v7, %v1739_v42 }
 0x345   :  { %v1763_v63 = vadd.f32 %v4094_v7, %v1740_v39  ;;  %v2562_v23 = vpop.eup %2561 }
 0x346   :  { %v1778_v47 = vsub.f32 0.0, %v1762_v45  ;;  %v2564_v59 = vpop.eup %2563  ;;  %v1824_v62 = vadd.f32 1.0, %v2562_v23 }
 0x347   :  { %v1779_v60 = vsub.f32 0.0, %v1763_v63  ;;  %v2566_v41 = vpop.eup %2565  ;;  %v1825_v34 = vadd.f32 1.0, %v2564_v59 }
 0x348   :  { %v1800_v31 = vmul.f32 1.442695, %v1778_v47  ;;  %v2568_v0 = vpop.eup %2567  ;;  %v1866_v5 = vmul.f32 %v2566_v41, %v4413_v6  ;;  %2569 = vrcp.f32 %v1824_v62 }
 0x349   :  { %v1802_v22 = vmul.f32 1.442695, %v1779_v60  ;;  %v1867_v1 = vmul.f32 %v2568_v0, %v4416_v24  ;;  %2571 = vrcp.f32 %v1825_v34 }
 0x34a   :  { %2573 = vpow2.f32 %v1800_v31 }
 0x34b   :  { %v1875_v32 = vpack.c.bf16 %v1867_v1, %v1866_v5  ;;  %2575 = vpow2.f32 %v1802_v22 }
 0x34d   :  { %2335 = vmatmul.mubr.bf16.gmra.mrb[20].mxu1 %v1875_v32 }
 0x352   :  { %v2570_v7 = vpop.eup %2569 }
 0x353   :  { %v2572_v9 = vpop.eup %2571  ;;  %v1856_v25 = vmul.f32 %v2570_v7, %v4466_v52 }
 0x354   :  { %v2574_v61 = vpop.eup %2573  ;;  %v1857_v38 = vmul.f32 %v2572_v9, %v4477_v57 }
 0x355   :  { %v2576_v49 = vpop.eup %2575  ;;  %v1826_v53 = vadd.f32 1.0, %v2574_v61 }
 0x356   :  { %v1870_v56 = vpack.c.bf16 %v1857_v38, %v1856_v25  ;;  %v1827_v6 = vadd.f32 1.0, %v2576_v49 }
 0x357   :  { %2577 = vrcp.f32 %v1826_v53 }
 0x358   :  { %2326 = vmatprep.mubr.bf16.mxu0 %v1870_v56  ;;  %2579 = vrcp.f32 %v1827_v6 }
 0x361   :  { %v2578_v24 = vpop.eup %2577 }
 0x362   :  { %v2580_v50 = vpop.eup %2579  ;;  %v1858_v29 = vmul.f32 %v2578_v24, %v1762_v45 }
 0x363   :  { %v1859_v46 = vmul.f32 %v2580_v50, %v1763_v63 }
 0x365   :  { %v1871_v58 = vpack.c.bf16 %v1859_v46, %v1858_v29 }
 0x367   :  { %2327 = vmatmul.mubr.bf16.gmra.mrb[20].mxu0 %v1871_v58 }
 0x3ee   :  { %v2332_v54 = vpop.f32.mrb[16].mxu1 }
 0x3ef   :  { %v2022_v52 = vadd.f32 %v2332_v54, %v4505_v19  ;;  %v2013_v3 = vpop.f32.mrb[17].mxu1 }
 0x3f0   :  { %v2014_v57 = vadd.f32 %v4505_v19, %v2013_v3  ;;  %v2333_v20 = vpop.f32.mrb[18].mxu1 }
 0x3f1   :  { %v2054_v40 = vsub.f32 0.0, %v2022_v52  ;;  %v2025_v30 = vadd.f32 %v2333_v20, %v4505_v19  ;;  %v2016_v16 = vpop.f32.mrb[19].mxu1 }
 0x3f2   :  { %v2052_v21 = vsub.f32 0.0, %v2014_v57  ;;  %v2017_v36 = vadd.f32 %v4505_v19, %v2016_v16 }
 0x3f3   :  { %v2080_v15 = vmul.f32 1.442695, %v2054_v40  ;;  %v2055_v51 = vsub.f32 0.0, %v2025_v30 }
 0x3f4   :  { %v2076_v55 = vmul.f32 1.442695, %v2052_v21  ;;  %v2053_v12 = vsub.f32 0.0, %v2017_v36 }
 0x3f5   :  { %2581 = vpow2.f32 %v2080_v15  ;;  %v2082_v11 = vmul.f32 1.442695, %v2055_v51 }
 0x3f6   :  { %2583 = vpow2.f32 %v2076_v55  ;;  %v2078_v44 = vmul.f32 1.442695, %v2053_v12 }
 0x3f7   :  { %2585 = vpow2.f32 %v2082_v11 }
 0x3f8   :  { %2587 = vpow2.f32 %v2078_v44 }
 0x3ff   :  { %v2582_v13 = vpop.eup %2581 }
 0x400   :  { %v2584_v17 = vpop.eup %2583  ;;  %v2102_v28 = vadd.f32 1.0, %v2582_v13 }
 0x401   :  { %v2586_v26 = vpop.eup %2585  ;;  %v2100_v14 = vadd.f32 1.0, %v2584_v17 }
 0x402   :  { %v2588_v27 = vpop.eup %2587  ;;  %v2103_v4 = vadd.f32 1.0, %v2586_v26 }
 0x403   :  { %2589 = vrcp.f32 %v2100_v14  ;;  %v2101_v8 = vadd.f32 1.0, %v2588_v27 }
 0x404   :  { %2591 = vrcp.f32 %v2102_v28 }
 0x405   :  { %2593 = vrcp.f32 %v2101_v8 }
 0x406   :  { %2595 = vrcp.f32 %v2103_v4 }
 0x40d   :  { %v2590_v33 = vpop.eup %2589 }
 0x40e   :  { %v2592_v48 = vpop.eup %2591  ;;  %v2132_v63 = vmul.f32 %v2590_v33, %v2014_v57 }
 0x40f   :  { %v2594_v43 = vpop.eup %2593  ;;  %v2134_v34 = vmul.f32 %v2592_v48, %v2022_v52 }
 0x410   :  { %v2133_v23 = vmul.f32 %v2594_v43, %v2017_v36  ;;  %v2596_v62 = vpop.eup %2595 }
 0x411   :  { %v2324_v18 = vpop.f32.mrb[16].mxu0  ;;  %v2135_v1 = vmul.f32 %v2596_v62, %v2025_v30 }
 0x412   :  { %v4512_v2 = vadd.f32 %v2324_v18, %v4505_v19  ;;  %v1981_v37 = vpop.f32.mrb[17].mxu0  ;;  %v2153_v31 = vadd.f32 %v2133_v23, %v2132_v63 }
 0x413   :  { %v4515_v35 = vadd.f32 %v4505_v19, %v1981_v37  ;;  %v2325_v10 = vpop.f32.mrb[18].mxu0 }
 0x414   :  { %v2046_v42 = vsub.f32 0.0, %v4512_v2  ;;  %v4519_v39 = vadd.f32 %v2325_v10, %v4505_v19  ;;  %v1984_v45 = vpop.f32.mrb[19].mxu0  ;;  %v2154_v32 = vadd.f32 %v2153_v31, %v2134_v34 }
 0x415   :  { %v2044_v47 = vsub.f32 0.0, %v4515_v35  ;;  %v1985_v59 = vadd.f32 %v4505_v19, %v1984_v45 }
 0x416   :  { %v2064_v60 = vmul.f32 1.442695, %v2046_v42  ;;  %v2047_v41 = vsub.f32 0.0, %v4519_v39  ;;  %v4524_v9 = vadd.f32 %v2154_v32, %v2135_v1 }
 0x417   :  { %v2060_v0 = vmul.f32 1.442695, %v2044_v47  ;;  %v2045_v5 = vsub.f32 0.0, %v1985_v59 }
 0x418   :  { %2597 = vpow2.f32 %v2064_v60  ;;  %v2066_v22 = vmul.f32 1.442695, %v2047_v41 }
 0x419   :  { %2599 = vpow2.f32 %v2060_v0  ;;  %v2062_v7 = vmul.f32 1.442695, %v2045_v5 }
 0x41b   :  { %2601 = vpow2.f32 %v2062_v7 }
 0x41c   :  { %2603 = vpow2.f32 %v2066_v22 }
 0x420   :  { %v2336_v61 = vpop.f32.mrb[20].mxu1 }
 0x421   :  { %v4527_v25 = vadd.f32 %v2336_v61, %v4505_v19  ;;  %v2029_v38 = vpop.f32.mrb[21].mxu1 }
 0x422   :  { %v2598_v49 = vpop.eup %2597  ;;  %v4530_v53 = vadd.f32 %v4505_v19, %v2029_v38  ;;  %v2337_v56 = vpop.f32.mrb[22].mxu1 }
 0x423   :  { %v2600_v6 = vpop.eup %2599  ;;  %v2094_v24 = vadd.f32 1.0, %v2598_v49  ;;  %v2058_v50 = vsub.f32 0.0, %v4527_v25  ;;  %v4534_v29 = vadd.f32 %v2337_v56, %v4505_v19  ;;  %v2032_v46 = vpop.f32.mrb[23].mxu1 }
 0x424   :  { %v2056_v58 = vsub.f32 0.0, %v4530_v53  ;;  %v4538_v54 = vadd.f32 %v4505_v19, %v2032_v46  ;;  %v2092_v57 = vadd.f32 1.0, %v2600_v6 }
 0x425   :  { %v2602_v52 = vpop.eup %2601  ;;  %v2088_v3 = vmul.f32 1.442695, %v2058_v50  ;;  %v2059_v20 = vsub.f32 0.0, %v4534_v29  ;;  %2605 = vrcp.f32 %v2094_v24 }
 0x426   :  { %v2604_v40 = vpop.eup %2603  ;;  %v2084_v30 = vmul.f32 1.442695, %v2056_v58  ;;  %v2057_v16 = vsub.f32 0.0, %v4538_v54  ;;  %v2093_v36 = vadd.f32 1.0, %v2602_v52 }
 0x427   :  { %2607 = vpow2.f32 %v2088_v3  ;;  %v2090_v21 = vmul.f32 1.442695, %v2059_v20  ;;  %v2095_v51 = vadd.f32 1.0, %v2604_v40 }
 0x428   :  { %2609 = vpow2.f32 %v2084_v30  ;;  %v2086_v15 = vmul.f32 1.442695, %v2057_v16 }
 0x429   :  { %2611 = vrcp.f32 %v2092_v57 }
 0x42a   :  { %2613 = vpow2.f32 %v2090_v21 }
 0x42b   :  { %2615 = vrcp.f32 %v2093_v36 }
 0x42c   :  { %2617 = vpow2.f32 %v2086_v15 }
 0x42d   :  { %2619 = vrcp.f32 %v2095_v51 }
 0x42f   :  { %v2606_v55 = vpop.eup %2605 }
 0x430   :  { %v2126_v37 = vmul.f32 %v2606_v55, %v4512_v2 }
 0x431   :  { %v2608_v12 = vpop.eup %2607 }
 0x432   :  { %v2610_v11 = vpop.eup %2609  ;;  %v2106_v28 = vadd.f32 1.0, %v2608_v12 }
 0x433   :  { %v2612_v44 = vpop.eup %2611  ;;  %v2104_v13 = vadd.f32 1.0, %v2610_v11 }
 0x434   :  { %v2614_v17 = vpop.eup %2613  ;;  %v2124_v27 = vmul.f32 %v2612_v44, %v4515_v35 }
 0x435   :  { %v2616_v26 = vpop.eup %2615  ;;  %2621 = vrcp.f32 %v2104_v13  ;;  %v2107_v18 = vadd.f32 1.0, %v2614_v17 }
 0x436   :  { %v2618_v14 = vpop.eup %2617  ;;  %v2125_v4 = vmul.f32 %v2616_v26, %v1985_v59  ;;  %2623 = vrcp.f32 %v2106_v28 }
 0x437   :  { %v2620_v8 = vpop.eup %2619  ;;  %v2105_v33 = vadd.f32 1.0, %v2618_v14 }
 0x438   :  { %v2140_v48 = vadd.f32 %v2125_v4, %v2124_v27  ;;  %v2127_v10 = vmul.f32 %v2620_v8, %v4519_v39 }
 0x439   :  { %2625 = vrcp.f32 %v2105_v33 }
 0x43a   :  { %v2141_v43 = vadd.f32 %v2140_v48, %v2126_v37  ;;  %v2328_v42 = vpop.f32.mrb[20].mxu0  ;;  %2627 = vrcp.f32 %v2107_v18 }
 0x43b   :  { %v2006_v45 = vadd.f32 %v2328_v42, %v4505_v19  ;;  %v1997_v63 = vpop.f32.mrb[21].mxu0 }
 0x43c   :  { %v1998_v23 = vadd.f32 %v4505_v19, %v1997_v63  ;;  %v2142_v35 = vadd.f32 %v2141_v43, %v2127_v10  ;;  %v2329_v47 = vpop.f32.mrb[22].mxu0 }
 0x43d   :  { %v2050_v59 = vsub.f32 0.0, %v2006_v45  ;;  %v2009_v62 = vadd.f32 %v2329_v47, %v4505_v19  ;;  %v2000_v60 = vpop.f32.mrb[23].mxu0 }
 0x43e   :  { %v2048_v2 = vsub.f32 0.0, %v1998_v23  ;;  %v2001_v41 = vadd.f32 %v4505_v19, %v2000_v60 }
 0x43f   :  { %v2622_v34 = vpop.eup %2621  ;;  %v2072_v31 = vmul.f32 1.442695, %v2050_v59  ;;  %v2051_v39 = vsub.f32 0.0, %v2009_v62 }
 0x440   :  { %v2136_v0 = vmul.f32 %v2622_v34, %v4530_v53  ;;  %v2068_v5 = vmul.f32 1.442695, %v2048_v2  ;;  %v2049_v22 = vsub.f32 0.0, %v2001_v41  ;;  %v2624_v32 = vpop.eup %2623 }
 0x441   :  { %2629 = vpow2.f32 %v2072_v31  ;;  %v2074_v1 = vmul.f32 1.442695, %v2051_v39  ;;  %v2138_v56 = vmul.f32 %v2624_v32, %v4527_v25 }
 0x442   :  { %v2156_v7 = vadd.f32 %v4524_v9, %v2136_v0  ;;  %2631 = vpow2.f32 %v2068_v5  ;;  %v2070_v61 = vmul.f32 1.442695, %v2049_v22 }
 0x443   :  { %v2626_v38 = vpop.eup %2625  ;;  %2633 = vpow2.f32 %v2074_v1 }
 0x444   :  { %v2137_v49 = vmul.f32 %v2626_v38, %v4538_v54  ;;  %2635 = vpow2.f32 %v2070_v61  ;;  %v2628_v19 = vpop.eup %2627 }
 0x445   :  { %v2139_v53 = vmul.f32 %v2628_v19, %v4534_v29 }
 0x446   :  { %v2157_v6 = vadd.f32 %v2156_v7, %v2137_v49 }
 0x448   :  { %v2158_v24 = vadd.f32 %v2157_v6, %v2138_v56 }
 0x44a   :  { %v2159_v50 = vadd.f32 %v2158_v24, %v2139_v53 }
 0x44b   :  { %v2630_v46 = vpop.eup %2629 }
 0x44c   :  { %v2632_v58 = vpop.eup %2631  ;;  %v2098_v52 = vadd.f32 1.0, %v2630_v46  ;;  %v2160_v25 = vrot.slane %v2159_v50, 4 }
 0x44d   :  { %v2634_v3 = vpop.eup %2633  ;;  %v2096_v9 = vadd.f32 1.0, %v2632_v58 }
 0x44e   :  { %v2636_v57 = vpop.eup %2635  ;;  %v2099_v20 = vadd.f32 1.0, %v2634_v3  ;;  %v2161_v51 = vadd.f32 %v2160_v25, %v2159_v50 }
 0x44f   :  { %2637 = vrcp.f32 %v2096_v9  ;;  %v2097_v40 = vadd.f32 1.0, %v2636_v57 }
 0x450   :  { %2639 = vrcp.f32 %v2098_v52  ;;  %v2162_v17 = vrot.slane %v2161_v51, 2 }
 0x451   :  { %2641 = vrcp.f32 %v2097_v40 }
 0x452   :  { %2643 = vrcp.f32 %v2099_v20  ;;  %v2163_v14 = vadd.f32 %v2162_v17, %v2161_v51 }
 0x454   :  { %v2164_v8 = vrot.slane %v2163_v14, 1 }
 0x456   :  { %v2165_v37 = vadd.f32 %v2164_v8, %v2163_v14 }
 0x459   :  { %v2638_v54 = vpop.eup %2637 }
 0x45a   :  { %v2640_v30 = vpop.eup %2639  ;;  %v2128_v16 = vmul.f32 %v2638_v54, %v1998_v23 }
 0x45b   :  { %v2642_v21 = vpop.eup %2641  ;;  %v2130_v55 = vmul.f32 %v2640_v30, %v2006_v45 }
 0x45c   :  { %v2143_v29 = vadd.f32 %v2142_v35, %v2128_v16  ;;  %v2129_v36 = vmul.f32 %v2642_v21, %v2001_v41  ;;  %v2644_v15 = vpop.eup %2643 }
 0x45d   :  { %v2131_v11 = vmul.f32 %v2644_v15, %v2009_v62 }
 0x45e   :  { %v2144_v12 = vadd.f32 %v2143_v29, %v2129_v36 }
 0x460   :  { %v2145_v44 = vadd.f32 %v2144_v12, %v2130_v55 }
 0x462   :  { %v2146_v13 = vadd.f32 %v2145_v44, %v2131_v11 }
 0x464   :  { %v2147_v28 = vrot.slane %v2146_v13, 4 }
 0x466   :  { %v2148_v26 = vadd.f32 %v2147_v28, %v2146_v13 }
 0x468   :  { %v2149_v27 = vrot.slane %v2148_v26, 2 }
 0x46a   :  { %v2150_v4 = vadd.f32 %v2149_v27, %v2148_v26 }
 0x46c   :  { %v2151_v18 = vrot.slane %v2150_v4, 1 }
 0x46e   :  { %v2152_v33 = vadd.f32 %v2151_v18, %v2150_v4 }
 0x470   :  { %v2167_v48 = vsel %vm2166_vm6, %v2152_v33, %v2165_v37 }
 0x471   :  { %v2168_v10 = vmul.f32 0.015625, %v2167_v48 }
 0x473   :  { %2169 = vst [vmem:[#allocation17] sm:$0x3] %v2168_v10 }
 0x474   :  { %2855 = shalt.err (!%p2852_p6)
}
 0x475   :  { %s2856_s29 = scalar_lea.hbm %s4575_s9, 32 }
 0x476   :  { %p2857_p7 = scmp.ne.s32.totalorder %s4575_s9, %s2856_s29  ;;  %p2860_p8 = scmp.lt.u32.totalorder %s2856_s29, %s4575_s9 }
 0x478   :  { %p2862_p9 = pnand %p2860_p8, %p2857_p7 }
 0x47a   :  { %2865 = shalt.err (!%p2862_p9)
}
 0x47b   :  { %2179 = dma.vmem_to_hbm [thread:$0]  %s2177_s27, 32, %s4575_s9, [#allocation4]  }
 0x47c   :  { %2876 = dma.done.wait [#allocation4], 32  }
 0x47d   :  { %2877 = vsyncadd [#allocation4], 4294967264 }
 0x47e   :  { %2183 = vsyncpa [#allocation3], 1 }
 0x47f   :  { %2184 = vsyncpa [#allocation6], 1 }
 0x480   :  { %2185 = vsyncpa [#allocation9], 1 }
 0x481   :  { %2186 = vsyncpa [#allocation12], 1 }
 0x482   :  { %2187 = vsyncpa [#allocation15], 1 }
 0x483   :  { %2188 = vsyncpa [#allocation4], 1 }

</bundles_post_ra>
